<compile_context>
chip_gen: v6e
topology: v6e:2x2x1
jax: 0.10.0
libtpu: 0.0.40
codegen_flags: <defaults>
</compile_context>

<pallas_src>
import jax
import jax.numpy as jnp
from jax.experimental import pallas as pl
from jax.experimental.pallas import tpu as pltpu


def _round_up(x, m):
    return ((x + m - 1) // m) * m


def _vmem_capacity_bytes():
    """Physical VMEM per core; conservative fallback when not on a TPU host."""
    try:
        return int(pltpu.get_tpu_info().vmem_capacity_bytes)
    except Exception:
        return 64 * 1024 * 1024   # v7x physical size (most restrictive)


# ----------------------------------------------------------------------------
# Pallas kernel: grouped expert FFN
#   out[tile] = ( silu(x @ w1[e]) * (x @ w3[e]) ) @ w2[e] * routing_weight
# where e = expert of this row tile (scalar-prefetched) and the contraction
# over the intermediate dim is tiled on grid axis 1 ("arbitrary").
# ----------------------------------------------------------------------------
def _moe_ffn_kernel(eid_ref, valid_ref,              # scalar prefetch (SMEM)
                    x_ref, wgt_ref, w1_ref, w3_ref, w2_ref,
                    o_ref, acc_ref):
    del eid_ref
    i = pl.program_id(0)
    j = pl.program_id(1)

    @pl.when(j == 0)
    def _():
        acc_ref[...] = jnp.zeros_like(acc_ref)

    # Skip all MXU work for pure-padding row tiles (their rows have routing
    # weight 0 and an out-of-bounds token index, so output stays zero/dropped).
    @pl.when(valid_ref[i] > 0)
    def _():
        x = x_ref[...]                                  # [TM, H]
        w1 = w1_ref[0]                                  # [H, tI]
        w3 = w3_ref[0]                                  # [H, tI]
        w2 = w2_ref[0]                                  # [tI, H]

        h1 = jnp.dot(x, w1, preferred_element_type=jnp.float32)
        h1 = h1 * jax.nn.sigmoid(h1)                    # silu, f32 (EUP)
        h3 = jnp.dot(x, w3, preferred_element_type=jnp.float32)
        h = (h1 * h3).astype(w2.dtype)                  # back to weight dtype for MXU
        acc_ref[...] += jnp.dot(h, w2, preferred_element_type=jnp.float32)

    @pl.when(j == pl.num_programs(1) - 1)
    def _():
        o_ref[...] = (acc_ref[...] * wgt_ref[...]).astype(o_ref.dtype)


def moe_expert_ffn(tile_expert, tile_valid, x_pad, wgt_pad, w1s, w3s, w2s,
                   *, tile_m, tile_i, out_dtype):
    """Grouped expert FFN on an expert-aligned padded row layout.

    tile_expert: [num_row_tiles] int32, expert id owning each tile_m-row tile.
    tile_valid:  [num_row_tiles] int32, 1 if the tile contains any real rows.
    x_pad:       [M_pad, H]  rows grouped by expert (padding rows arbitrary finite).
    wgt_pad:     [M_pad, 1]  f32 routing weight per row (0 for padding rows).
    w1s, w3s:    [E, H, I]
    w2s:         [E, I, H]
    """
    M_pad, H = x_pad.shape
    E, _, I = w1s.shape
    num_tiles = M_pad // tile_m

    # Tile (and, if needed, zero-pad) the intermediate dimension.  Zero pad is
    # exact: silu(0) * 0 = 0 and zero rows of w2 contribute nothing.
    if I <= tile_i:
        ti = I
        I_pad = I
    else:
        ti = tile_i
        I_pad = _round_up(I, ti)
        pad_i = I_pad - I
        if pad_i:
            w1s = jnp.pad(w1s, ((0, 0), (0, 0), (0, pad_i)))
            w3s = jnp.pad(w3s, ((0, 0), (0, 0), (0, pad_i)))
            w2s = jnp.pad(w2s, ((0, 0), (0, pad_i), (0, 0)))
    num_i = I_pad // ti

    w_bytes = jnp.dtype(w1s.dtype).itemsize
    x_bytes = jnp.dtype(x_pad.dtype).itemsize
    o_bytes = jnp.dtype(out_dtype).itemsize

    vmem_needed = (2 * tile_m * H * x_bytes            # x (double-buffered)
                   + 2 * tile_m * 128 * 4              # routing weights, lane-padded
                   + 2 * 3 * H * ti * w_bytes          # w1/w3/w2 (double-buffered)
                   + 2 * tile_m * H * o_bytes          # out (double-buffered)
                   + tile_m * H * 4                    # f32 accumulator scratch
                   + 3 * tile_m * ti * 4)              # h1/h3/h f32 temporaries
    cap = _vmem_capacity_bytes()
    vmem_limit = min(max(int(1.3 * vmem_needed), 32 * 1024 * 1024),
                     int(0.85 * cap))
    vmem_limit = max(vmem_limit, vmem_needed)

    cost = pl.CostEstimate(
        flops=6 * M_pad * H * I_pad,
        transcendentals=M_pad * I_pad,
        bytes_accessed=(num_tiles * 3 * H * I_pad * w_bytes
                        + M_pad * H * (x_bytes + o_bytes)),
    )

    # Weight index_maps: for padding tiles (valid == 0) the intermediate-dim
    # block index collapses to 0 and the expert id repeats the last real
    # tile's, so Pallas's revisit detection skips their weight DMAs.
    w13_map = lambda i, j, eid, valid: (eid[i], 0, j * valid[i])
    w2_map = lambda i, j, eid, valid: (eid[i], j * valid[i], 0)

    # TODO(synk): pipeline_mode=pl.Buffered(3) on the weight BlockSpecs once
    # tuned per-generation, and an fp8 (v7x) / int8 (v6e) weight path with
    # post-accumulation dequant scales, would further shift the HBM roofline.
    return pl.pallas_call(
        _moe_ffn_kernel,
        out_shape=jax.ShapeDtypeStruct((M_pad, H), out_dtype),
        grid_spec=pltpu.PrefetchScalarGridSpec(
            num_scalar_prefetch=2,
            grid=(num_tiles, num_i),
            in_specs=[
                pl.BlockSpec((tile_m, H), lambda i, j, eid, valid: (i, 0)),   # x
                pl.BlockSpec((tile_m, 1), lambda i, j, eid, valid: (i, 0)),   # routing w
                pl.BlockSpec((1, H, ti), w13_map),                            # w1[e]
                pl.BlockSpec((1, H, ti), w13_map),                            # w3[e]
                pl.BlockSpec((1, ti, H), w2_map),                             # w2[e]
            ],
            out_specs=pl.BlockSpec((tile_m, H), lambda i, j, eid, valid: (i, 0)),
            scratch_shapes=[pltpu.VMEM((tile_m, H), jnp.float32)],
        ),
        compiler_params=pltpu.CompilerParams(
            dimension_semantics=("parallel", "arbitrary"),
            vmem_limit_bytes=vmem_limit),
        cost_estimate=cost,
    )(tile_expert, tile_valid, x_pad, wgt_pad, w1s, w3s, w2s)


# ----------------------------------------------------------------------------
# MoE module (JAX glue around the Pallas kernel)
# ----------------------------------------------------------------------------
class MoE:
    def __init__(self, num_experts, top_k, hidden_size, intermediate_size,
                 key, *, param_dtype=jnp.bfloat16, tile_m=256, tile_i=None):
        self.num_total_experts = num_experts
        self.top_k = top_k
        self.hidden_size = hidden_size
        self.intermediate_size = intermediate_size      # tp_size == 1
        self.tile_m = tile_m                            # 256: fills v6e/v7x MXU rows
        if tile_i is None:
            # 128 MiB VMEM parts (v5e/v6e) can double-buffer much larger
            # intermediate-dim weight tiles than 64 MiB v7x.
            tile_i = 1024 if _vmem_capacity_bytes() >= (100 << 20) else 512
        self.tile_i = tile_i

        k0, k1, k2, k3 = jax.random.split(key, 4)
        scale = 0.05
        # Router stays f32 for routing accuracy; expert weights in param_dtype.
        self.gate_w = (scale * jax.random.normal(
            k0, (hidden_size, num_experts))).astype(jnp.float32)
        self.w1s = (scale * jax.random.normal(
            k1, (num_experts, hidden_size, intermediate_size))).astype(param_dtype)
        self.w2s = (scale * jax.random.normal(
            k2, (num_experts, intermediate_size, hidden_size))).astype(param_dtype)
        self.w3s = (scale * jax.random.normal(
            k3, (num_experts, hidden_size, intermediate_size))).astype(param_dtype)

    def __call__(self, hidden_states):
        B, S, H = hidden_states.shape
        E, K = self.num_total_experts, self.top_k
        tile_m = self.tile_m
        compute_dtype = self.w1s.dtype

        x = hidden_states.reshape(-1, H)                          # [T, H]
        T = x.shape[0]
        M = T * K

        # --- Router: tiny GEMM, plain XLA -------------------------------------
        router_logits = jnp.dot(x.astype(jnp.float32), self.gate_w)
        routing_probs = jax.nn.softmax(router_logits, axis=-1)
        routing_weights, selected_experts = jax.lax.top_k(routing_probs, K)
        routing_weights = routing_weights / jnp.sum(routing_weights, axis=-1,
                                                    keepdims=True)

        # --- Sort expanded rows by expert; compute group ranges ---------------
        flat_experts = selected_experts.reshape(-1).astype(jnp.int32)      # [M]
        sort_idx = jnp.argsort(flat_experts)
        sorted_weights = routing_weights.reshape(-1)[sort_idx]             # [M]
        token_indices = (sort_idx // K).astype(jnp.int32)                  # [M]

        group_sizes = jnp.bincount(flat_experts, length=E).astype(jnp.int32)
        group_offsets = jnp.concatenate(
            [jnp.zeros(1, jnp.int32), jnp.cumsum(group_sizes)]).astype(jnp.int32)
        aligned_sizes = ((group_sizes + tile_m - 1) // tile_m) * tile_m
        aligned_offsets = jnp.concatenate(
            [jnp.zeros(1, jnp.int32), jnp.cumsum(aligned_sizes)]).astype(jnp.int32)
        total_aligned = aligned_offsets[E]

        # Static upper bound on the expert-aligned row count (multiple of tile_m).
        M_pad = _round_up(M, tile_m) + E * tile_m
        num_tiles = M_pad // tile_m

        # --- Gather rows into the expert-aligned layout (no scatter pass) -----
        # TODO(synk): this row gather could be fused into the kernel with
        # scalar-prefetched per-row token indices (pl.Element row blocks),
        # removing the materialized x_pad entirely.
        row_pos = jnp.arange(M_pad, dtype=jnp.int32)
        row_e = jnp.clip(
            jnp.searchsorted(aligned_offsets, row_pos, side='right') - 1,
            0, E - 1).astype(jnp.int32)
        within = row_pos - aligned_offsets[row_e]
        is_real = (within < group_sizes[row_e]) & (row_pos < total_aligned)
        src_sorted = jnp.where(is_real, group_offsets[row_e] + within, M)  # M = OOB

        # Padded rows: token index T (dropped by the final scatter-add), zero
        # inputs, zero routing weight.
        tok_pad = jnp.take(token_indices, src_sorted, mode='fill',
                           fill_value=T).astype(jnp.int32)
        x_pad = jnp.take(x, tok_pad, axis=0, mode='fill',
                         fill_value=0.0).astype(compute_dtype)
        wgt_pad = jnp.take(sorted_weights, src_sorted, mode='fill',
                           fill_value=0.0).astype(jnp.float32)[:, None]

        # --- Per-row-tile expert id + validity (scalar prefetch) --------------
        tile_start = jnp.arange(num_tiles, dtype=jnp.int32) * tile_m
        tile_e = jnp.clip(
            jnp.searchsorted(aligned_offsets, tile_start, side='right') - 1,
            0, E - 1).astype(jnp.int32)
        tile_valid = (tile_start < total_aligned).astype(jnp.int32)
        num_valid_tiles = jnp.maximum(total_aligned // tile_m, 1)
        last_eid = tile_e[num_valid_tiles - 1]
        tile_expert = jnp.where(tile_valid > 0, tile_e, last_eid).astype(jnp.int32)

        expanded_out = moe_expert_ffn(
            tile_expert, tile_valid, x_pad, wgt_pad,
            self.w1s, self.w3s, self.w2s,
            tile_m=tile_m, tile_i=self.tile_i, out_dtype=hidden_states.dtype)

        # tp_size == 1 -> tensor_model_parallel_all_reduce is a no-op.

        # Merge expert outputs back to token order.  Padded rows carry an
        # out-of-bounds token index and are dropped by the scatter-add.
        out = jnp.zeros((T, H), expanded_out.dtype).at[tok_pad].add(
            expanded_out, mode='drop')
        return out.reshape(B, S, H)


# ----------------------------------------------------------------------------
# Pure-JAX reference (dense).  All dots are done in f32 on f32-upcast operands
# (numerically equivalent to bf16-input / f32-accumulate MXU matmuls) so the
# reference also runs on backends without bf16 dot support.
# ----------------------------------------------------------------------------
def moe_reference(moe, hidden_states):
    B, S, H = hidden_states.shape
    x = hidden_states.reshape(-1, H).astype(jnp.float32)

    logits = jnp.dot(x, moe.gate_w)
    probs = jax.nn.softmax(logits, axis=-1)
    w, sel = jax.lax.top_k(probs, moe.top_k)
    w = w / jnp.sum(w, axis=-1, keepdims=True)

    # Round activations/weights to the kernel's compute dtype, then do the
    # actual contractions in f32.
    xc = x.astype(moe.w1s.dtype).astype(jnp.float32)
    w1 = moe.w1s.astype(jnp.float32)
    w3 = moe.w3s.astype(jnp.float32)
    w2 = moe.w2s.astype(jnp.float32)

    h1 = jnp.einsum('th,ehi->tei', xc, w1)
    h1 = h1 * jax.nn.sigmoid(h1)
    h3 = jnp.einsum('th,ehi->tei', xc, w3)
    h = (h1 * h3).astype(moe.w2s.dtype).astype(jnp.float32)
    per_expert = jnp.einsum('tei,eih->teh', h, w2)                # [T, E, H]

    gathered = jnp.take_along_axis(per_expert, sel[:, :, None], axis=1)
    out = jnp.sum(gathered * w[:, :, None], axis=1)
    return out.reshape(B, S, H).astype(hidden_states.dtype)


if __name__ == "__main__":
    key = jax.random.PRNGKey(0)
    k_param, k_in = jax.random.split(key)

    num_experts = 4
    top_k = 2
    hidden_size = 32
    intermediate_size = 64
    batch, seq = 2, 8

    # f32 params for the small correctness check (bf16 is the production
    # default); avoids BF16xBF16=F32 dots that the CPU/interpret backend rejects.
    moe = MoE(num_experts, top_k, hidden_size, intermediate_size, k_param,
              param_dtype=jnp.float32)
    hidden_states = jax.random.normal(
        k_in, (batch, seq, hidden_size), dtype=jnp.float32)

    out = jax.block_until_ready(moe(hidden_states))
    ref = jax.block_until_ready(moe_reference(moe, hidden_states))

    assert out.shape == (batch, seq, hidden_size)
    max_err = float(jnp.max(jnp.abs(out - ref)))
    assert jnp.allclose(out, ref, rtol=2e-2, atol=1e-3), max_err

    print("KERNEL_OK")
</pallas_src>

<mosaic_0001>
module attributes {stable_mosaic.version = 11 : i64} {
  func.func @_moe_ffn_kernel(%arg0: i32, %arg1: i32, %arg2: memref<5xi32, #tpu.memory_space<smem>>, %arg3: memref<5xi32, #tpu.memory_space<smem>>, %arg4: memref<256x32xf32, #tpu.memory_space<vmem>>, %arg5: memref<256x1xf32, #tpu.memory_space<vmem>>, %arg6: memref<1x32x64xf32, #tpu.memory_space<vmem>>, %arg7: memref<1x32x64xf32, #tpu.memory_space<vmem>>, %arg8: memref<1x64x32xf32, #tpu.memory_space<vmem>>, %arg9: memref<256x32xf32, #tpu.memory_space<vmem>>, %arg10: memref<256x32xf32, #tpu.memory_space<vmem>>) attributes {dimension_semantics = [#tpu.dimension_semantics<parallel>, #tpu.dimension_semantics<arbitrary>], iteration_bounds = array<i64: 5, 1>, scalar_prefetch = 2 : i64, scratch_operands = 1 : i64, tpu.core_type = #tpu.core_type<tc>, window_params = [{transform_indices = @transform_0, window_bounds = array<i64: 256, 32>}, {transform_indices = @transform_1, window_bounds = array<i64: 256, 1>}, {transform_indices = @transform_2, window_bounds = array<i64: 1, 32, 64>}, {transform_indices = @transform_3, window_bounds = array<i64: 1, 32, 64>}, {transform_indices = @transform_4, window_bounds = array<i64: 1, 64, 32>}, {transform_indices = @transform_5, window_bounds = array<i64: 256, 32>}]} {
    %c0_i32 = arith.constant 0 : i32
    %0 = arith.cmpi eq, %arg1, %c0_i32 : i32
    %1 = arith.extui %0 : i1 to i32
    %c0_i32_0 = arith.constant 0 : i32
    %2 = arith.cmpi ne, %1, %c0_i32_0 : i32
    scf.if %2 {
      %cst = arith.constant 0.000000e+00 : f32
      %11 = vector.broadcast %cst : f32 to vector<256x32xf32>
      %c0 = arith.constant 0 : index
      %c0_5 = arith.constant 0 : index
      %12 = vector.load %arg10[%c0, %c0_5] : memref<256x32xf32, #tpu.memory_space<vmem>>, vector<256x32xf32>
      tpu.vector_store %arg10[%c0, %c0_5], %11 {strides = array<i32>} : memref<256x32xf32, #tpu.memory_space<vmem>>, vector<256x32xf32>,
    } else {
    }
    %3 = arith.index_cast %arg0 : i32 to index
    %4 = memref.load %arg3[%3] : memref<5xi32, #tpu.memory_space<smem>>
    %c0_i32_1 = arith.constant 0 : i32
    %5 = arith.cmpi sgt, %4, %c0_i32_1 : i32
    %6 = arith.extui %5 : i1 to i32
    %c0_i32_2 = arith.constant 0 : i32
    %7 = arith.cmpi ne, %6, %c0_i32_2 : i32
    scf.if %7 {
      %c0 = arith.constant 0 : index
      %c0_5 = arith.constant 0 : index
      %11 = vector.load %arg4[%c0, %c0_5] : memref<256x32xf32, #tpu.memory_space<vmem>>, vector<256x32xf32>
      %c0_6 = arith.constant 0 : index
      %c0_7 = arith.constant 0 : index
      %c0_8 = arith.constant 0 : index
      %12 = vector.load %arg6[%c0_6, %c0_7, %c0_8] : memref<1x32x64xf32, #tpu.memory_space<vmem>>, vector<1x32x64xf32>
      %13 = vector.shape_cast %12 : vector<1x32x64xf32> to vector<32x64xf32>
      %c0_9 = arith.constant 0 : index
      %c0_10 = arith.constant 0 : index
      %c0_11 = arith.constant 0 : index
      %14 = vector.load %arg7[%c0_9, %c0_10, %c0_11] : memref<1x32x64xf32, #tpu.memory_space<vmem>>, vector<1x32x64xf32>
      %15 = vector.shape_cast %14 : vector<1x32x64xf32> to vector<32x64xf32>
      %c0_12 = arith.constant 0 : index
      %c0_13 = arith.constant 0 : index
      %c0_14 = arith.constant 0 : index
      %16 = vector.load %arg8[%c0_12, %c0_13, %c0_14] : memref<1x64x32xf32, #tpu.memory_space<vmem>>, vector<1x64x32xf32>
      %17 = vector.shape_cast %16 : vector<1x64x32xf32> to vector<64x32xf32>
      %cst = arith.constant dense<0.000000e+00> : vector<256x64xf32>
      %18 = tpu.matmul %11, %13, %cst {dimension_numbers = #tpu.dot_dimension_numbers<[1], [0], [0], [1], [0, 0, 1, 1], [], []>} : vector<256x32xf32>, vector<32x64xf32>, vector<256x64xf32> -> vector<256x64xf32>
      %19 = arith.negf %18 : vector<256x64xf32>
      %20 = math.exp %19 : vector<256x64xf32>
      %cst_15 = arith.constant 1.000000e+00 : f32
      %21 = vector.broadcast %cst_15 : f32 to vector<256x64xf32>
      %22 = arith.addf %21, %20 : vector<256x64xf32>
      %23 = arith.divf %21, %22 : vector<256x64xf32>
      %24 = arith.mulf %18, %23 : vector<256x64xf32>
      %cst_16 = arith.constant dense<0.000000e+00> : vector<256x64xf32>
      %25 = tpu.matmul %11, %15, %cst_16 {dimension_numbers = #tpu.dot_dimension_numbers<[1], [0], [0], [1], [0, 0, 1, 1], [], []>} : vector<256x32xf32>, vector<32x64xf32>, vector<256x64xf32> -> vector<256x64xf32>
      %26 = arith.mulf %24, %25 : vector<256x64xf32>
      %c0_17 = arith.constant 0 : index
      %c0_18 = arith.constant 0 : index
      %27 = vector.load %arg10[%c0_17, %c0_18] : memref<256x32xf32, #tpu.memory_space<vmem>>, vector<256x32xf32>
      %cst_19 = arith.constant dense<0.000000e+00> : vector<256x32xf32>
      %28 = tpu.matmul %26, %17, %cst_19 {dimension_numbers = #tpu.dot_dimension_numbers<[1], [0], [0], [1], [0, 0, 1, 1], [], []>} : vector<256x64xf32>, vector<64x32xf32>, vector<256x32xf32> -> vector<256x32xf32>
      %29 = arith.addf %27, %28 : vector<256x32xf32>
      %c0_20 = arith.constant 0 : index
      %c0_21 = arith.constant 0 : index
      %30 = vector.load %arg10[%c0_20, %c0_21] : memref<256x32xf32, #tpu.memory_space<vmem>>, vector<256x32xf32>
      tpu.vector_store %arg10[%c0_20, %c0_21], %29 {strides = array<i32>} : memref<256x32xf32, #tpu.memory_space<vmem>>, vector<256x32xf32>,
    } else {
    }
    %c0_i32_3 = arith.constant 0 : i32
    %8 = arith.cmpi eq, %arg1, %c0_i32_3 : i32
    %9 = arith.extui %8 : i1 to i32
    %c0_i32_4 = arith.constant 0 : i32
    %10 = arith.cmpi ne, %9, %c0_i32_4 : i32
    scf.if %10 {
      %c0 = arith.constant 0 : index
      %c0_5 = arith.constant 0 : index
      %11 = vector.load %arg10[%c0, %c0_5] : memref<256x32xf32, #tpu.memory_space<vmem>>, vector<256x32xf32>
      %c0_6 = arith.constant 0 : index
      %c0_7 = arith.constant 0 : index
      %12 = vector.load %arg5[%c0_6, %c0_7] : memref<256x1xf32, #tpu.memory_space<vmem>>, vector<256x1xf32>
      %13 = vector.broadcast %12 : vector<256x1xf32> to vector<256x32xf32>
      %14 = arith.mulf %11, %13 : vector<256x32xf32>
      %c0_8 = arith.constant 0 : index
      %c0_9 = arith.constant 0 : index
      %15 = vector.load %arg9[%c0_8, %c0_9] : memref<256x32xf32, #tpu.memory_space<vmem>>, vector<256x32xf32>
      tpu.vector_store %arg9[%c0_8, %c0_9], %14 {strides = array<i32>} : memref<256x32xf32, #tpu.memory_space<vmem>>, vector<256x32xf32>,
    } else {
    }
    return
  }
  func.func @transform_0(%arg0: i32, %arg1: i32, %arg2: memref<5xi32, #tpu.memory_space<smem>>, %arg3: memref<5xi32, #tpu.memory_space<smem>>) -> (i32, i32) {
    %c0_i32 = arith.constant 0 : i32
    %c0_i32_0 = arith.constant 0 : i32
    return %arg0, %c0_i32 : i32, i32
  }
  func.func @transform_1(%arg0: i32, %arg1: i32, %arg2: memref<5xi32, #tpu.memory_space<smem>>, %arg3: memref<5xi32, #tpu.memory_space<smem>>) -> (i32, i32) {
    %c0_i32 = arith.constant 0 : i32
    %c0_i32_0 = arith.constant 0 : i32
    return %arg0, %c0_i32 : i32, i32
  }
  func.func @transform_2(%arg0: i32, %arg1: i32, %arg2: memref<5xi32, #tpu.memory_space<smem>>, %arg3: memref<5xi32, #tpu.memory_space<smem>>) -> (i32, i32, i32) {
    %0 = arith.index_cast %arg0 : i32 to index
    %1 = memref.load %arg2[%0] : memref<5xi32, #tpu.memory_space<smem>>
    %2 = arith.index_cast %arg0 : i32 to index
    %3 = memref.load %arg3[%2] : memref<5xi32, #tpu.memory_space<smem>>
    %4 = arith.muli %arg1, %3 : i32
    %c0_i32 = arith.constant 0 : i32
    %c0_i32_0 = arith.constant 0 : i32
    return %1, %c0_i32, %4 : i32, i32, i32
  }
  func.func @transform_3(%arg0: i32, %arg1: i32, %arg2: memref<5xi32, #tpu.memory_space<smem>>, %arg3: memref<5xi32, #tpu.memory_space<smem>>) -> (i32, i32, i32) {
    %0 = arith.index_cast %arg0 : i32 to index
    %1 = memref.load %arg2[%0] : memref<5xi32, #tpu.memory_space<smem>>
    %2 = arith.index_cast %arg0 : i32 to index
    %3 = memref.load %arg3[%2] : memref<5xi32, #tpu.memory_space<smem>>
    %4 = arith.muli %arg1, %3 : i32
    %c0_i32 = arith.constant 0 : i32
    %c0_i32_0 = arith.constant 0 : i32
    return %1, %c0_i32, %4 : i32, i32, i32
  }
  func.func @transform_4(%arg0: i32, %arg1: i32, %arg2: memref<5xi32, #tpu.memory_space<smem>>, %arg3: memref<5xi32, #tpu.memory_space<smem>>) -> (i32, i32, i32) {
    %0 = arith.index_cast %arg0 : i32 to index
    %1 = memref.load %arg2[%0] : memref<5xi32, #tpu.memory_space<smem>>
    %2 = arith.index_cast %arg0 : i32 to index
    %3 = memref.load %arg3[%2] : memref<5xi32, #tpu.memory_space<smem>>
    %4 = arith.muli %arg1, %3 : i32
    %c0_i32 = arith.constant 0 : i32
    %c0_i32_0 = arith.constant 0 : i32
    return %1, %4, %c0_i32 : i32, i32, i32
  }
  func.func @transform_5(%arg0: i32, %arg1: i32, %arg2: memref<5xi32, #tpu.memory_space<smem>>, %arg3: memref<5xi32, #tpu.memory_space<smem>>) -> (i32, i32) {
    %c0_i32 = arith.constant 0 : i32
    %c0_i32_0 = arith.constant 0 : i32
    return %arg0, %c0_i32 : i32, i32
  }
}

</mosaic_0001>

<bundles_post_ra>
// kernel: tpu_custom_call.1
= control target key start
LH: loop header
LB: loop body
LE: loop exit
PB: predicated region body
PF: predicated region fallthrough
CT: control target
= control target key end

     0   :  { %s3474_s0 = inlined_call_operand.vmem [shape: s32[5], index: 0, kind: input, shape index: {}]   ;;  %s3475_s2 = inlined_call_operand.vmem [shape: f32[1280,32], index: 2, kind: input, shape index: {}]   ;;  %s3476_s3 = inlined_call_operand.vmem [shape: f32[1280,1], index: 3, kind: input, shape index: {}]   ;;  %s3477_s4 = inlined_call_operand.vmem [shape: f32[4,32,64], index: 4, kind: input, shape index: {}]   ;;  %s3478_s5 = inlined_call_operand.vmem [shape: f32[4,32,64], index: 5, kind: input, shape index: {}]   ;;  %s3479_s6 = inlined_call_operand.vmem [shape: f32[4,64,32], index: 6, kind: input, shape index: {}]   ;;  %s3480_s7 = inlined_call_operand.vmem [shape: f32[1280,32], index: 7, kind: output, shape index: {}]   ;;  %s3481_s1 = inlined_call_operand.vmem [shape: s32[5], index: 1, kind: input, shape index: {}]  }
   0x1   :  { %s12_s26 = sshll.u32 %s3474_s0, 4  ;;  %s16_s29 = sshll.u32 %s3481_s1, 4  ;;  %s13_s26 = int_to_ptr.vmem [resolvable:$true] %s12_s26  ;;  %s17_s29 = int_to_ptr.vmem [resolvable:$true] %s16_s29 }
   0x2   :  { %s2774_s30 = scalar_lea.vmem %s13_s26, 16  ;;  %p2779_p1 = scmp.lt.s32.totalorder %s13_s26, %s13_s26 }
   0x3   :  { %p2775_p0 = scmp.ne.s32.totalorder %s13_s26, %s2774_s30  ;;  %p2780_p2 = scmp.lt.s32.totalorder %s2774_s30, %s2774_s30 }
   0x5   :  { %p2781_p3 = por %p2780_p2, %p2779_p1 }
   0x7   :  { %p2782_p4 = pnand %p2781_p3, %p2775_p0 }
   0x9   :  { %2785 = shalt.err (!%p2782_p4)  }
   0xa   :  { %s2824_s8 = smov [#allocation4]   ;;  %s2786_s9 = scalar_lea.vmem %s17_s29, 16 }
   0xb   :  { %15 = dma.vmem_to_smem %s13_s26, 16, %s2824_s8, [#allocation3] }
   0xc   :  { %p2787_p5 = scmp.ne.s32.totalorder %s17_s29, %s2786_s9  ;;  %p2791_p6 = scmp.lt.s32.totalorder %s17_s29, %s17_s29 }
   0xd   :  { %p2792_p7 = scmp.lt.s32.totalorder %s2786_s9, %s2786_s9 }
   0xf   :  { %p2793_p8 = por %p2792_p7, %p2791_p6 }
  0x11   :  { %p2794_p9 = pnand %p2793_p8, %p2787_p5 }
  0x13   :  { %2797 = shalt.err (!%p2794_p9)  }
  0x14   :  { %s2825_s0 = smov [#allocation5]  }
  0x15   :  { %19 = dma.vmem_to_smem %s17_s29, 16, %s2825_s0, [#allocation3] }
  0x16   :  { %2810 = dma.done.wait [#allocation3], 32 }
  0x17   :  { %2811 = vsyncadd [#allocation3], 4294967264 }
  0x18   :  { %21 = sfence }
  0x19   :  { %s2874_s1 = smov 0   ;;  %s2876_s10 = smov 0  }
  0x1a   :  { %s2878_s11 = smov 0  }
  0x1b LB: > { %s39_s12 = sadd.s32 1, %s2818_s10  ;;  %p2173_p10 = scmp.ge.s32.totalorder %s2822_s11, 1  ;;  %s2822_s11 = sphi %s2878_s11, %s27_s11   ;;  %s2818_s10 = sphi %s2876_s10, %s3484_s10   ;;  %s2814_s1 = sphi %s2874_s1, %s3483_s1  }
  0x1c   : > { %p41_p11 = scmp.ge.s32.totalorder %s39_s12, 5  ;;  %p306_p12 = scmp.lt.s32.totalorder %s2822_s11, 6 }
  0x1e   : > { %s3486_s12 = smov (%p41_p11, %s39_s12), 0  ;;  %p307_p13 = pnand %p2173_p10, %p306_p12 }
  0x1f   : > { %s2174_s13 = sshll.u32 (!%p307_p13), %s2814_s1, 5  ;;  %s2896_s14 = sld [smem:[#allocation4 + %s2814_s1]] (!%p307_p13) }
  0x20   : > { %310 = sbr.rel (%p307_p13) target bundleno = 758 (0x2f6), region = 40  ;;  %p2900_p0 = scmp.lt.s32.totalorder (!%p307_p13), %s2174_s13, 159 }
  0x21   : > { %s2905_s16 = sld [smem:[#allocation4 + %s2814_s1]] (!%p307_p13) }
  0x22   : > { %s413_s17 = sld [smem:[#allocation4 + %s2814_s1]] (!%p307_p13) }
  0x23   : > { %s472_s18 = sld [smem:[#allocation5 + %s2814_s1]] (!%p307_p13) }
  0x25   : > { %vm439_vm0 = vcmask 261120   ;;  %v2826_v0 = vmov 0.0   ;;  %s3488_s13 = smov (!%p2900_p0, %s2174_s13), 159  ;;  %p388_p1 = scmp.lt.s32.totalorder %s2896_s14, 3 }
  0x26   : > { %440 = vst.msk [vmem:[#allocation2] sm:$0xff] %vm439_vm0, %v2826_v0  ;;  %441 = vst.msk [vmem:[#allocation2 + $0x8] sm:$0xff] %vm439_vm0, %v2826_v0  ;;  %s2175_s19 = sshll.u32 %s3488_s13, 3 }
  0x27   : > { %442 = vst.msk [vmem:[#allocation2 + $0x10] sm:$0xff] %vm439_vm0, %v2826_v0  ;;  %443 = vst.msk [vmem:[#allocation2 + $0x18] sm:$0xff] %vm439_vm0, %v2826_v0  ;;  %s2948_s22 = scalar_lea.vmem %s3475_s2, %s2175_s19  ;;  %s2953_s25 = scalar_lea.vmem %s3476_s3, %s2175_s19 }
  0x28   : > { %444 = vst.msk [vmem:[#allocation2 + $0x20] sm:$0xff] %vm439_vm0, %v2826_v0  ;;  %445 = vst.msk [vmem:[#allocation2 + $0x28] sm:$0xff] %vm439_vm0, %v2826_v0  ;;  %p402_p2 = scmp.lt.s32.totalorder %s2905_s16, 3  ;;  %p417_p3 = scmp.lt.s32.totalorder %s413_s17, 3 }
  0x29   : > { %446 = vst.msk [vmem:[#allocation2 + $0x30] sm:$0xff] %vm439_vm0, %v2826_v0  ;;  %447 = vst.msk [vmem:[#allocation2 + $0x38] sm:$0xff] %vm439_vm0, %v2826_v0  ;;  %s2960_s28 = scalar_lea.vmem %s3480_s7, %s2175_s19  ;;  %s3490_s14 = smov (!%p388_p1, %s2896_s14), 3 }
  0x2a   : > { %448 = vst.msk [vmem:[#allocation2 + $0x40] sm:$0xff] %vm439_vm0, %v2826_v0  ;;  %449 = vst.msk [vmem:[#allocation2 + $0x48] sm:$0xff] %vm439_vm0, %v2826_v0  ;;  %s3492_s16 = smov (!%p402_p2, %s2905_s16), 3  ;;  %s2317_s29 = sshll.u32 %s3490_s14, 5 }
  0x2b   : > { %450 = vst.msk [vmem:[#allocation2 + $0x50] sm:$0xff] %vm439_vm0, %v2826_v0  ;;  %451 = vst.msk [vmem:[#allocation2 + $0x58] sm:$0xff] %vm439_vm0, %v2826_v0  ;;  %s395_s9 = scalar_lea.vmem %s3477_s4, %s2317_s29  ;;  %s2318_s0 = sshll.u32 %s3492_s16, 5 }
  0x2c   : > { %452 = vst.msk [vmem:[#allocation2 + $0x60] sm:$0xff] %vm439_vm0, %v2826_v0  ;;  %453 = vst.msk [vmem:[#allocation2 + $0x68] sm:$0xff] %vm439_vm0, %v2826_v0  ;;  %s2970_s15 = scalar_lea.vmem %s3478_s5, %s2318_s0  ;;  %s3494_s17 = smov (!%p417_p3, %s413_s17), 3 }
  0x2d   : > { %454 = vst.msk [vmem:[#allocation2 + $0x70] sm:$0xff] %vm439_vm0, %v2826_v0  ;;  %455 = vst.msk [vmem:[#allocation2 + $0x78] sm:$0xff] %vm439_vm0, %v2826_v0  ;;  %s2319_s20 = sshll.u32 %s3494_s17, 6  ;;  %p2186_p4 = scmp.le.s32.totalorder %s472_s18, 0 }
  0x2e   : > { %456 = vst.msk [vmem:[#allocation2 + $0x80] sm:$0xff] %vm439_vm0, %v2826_v0  ;;  %457 = vst.msk [vmem:[#allocation2 + $0x88] sm:$0xff] %vm439_vm0, %v2826_v0  ;;  %s2975_s19 = scalar_lea.vmem %s3479_s6, %s2319_s20 }
  0x2f   : > { %458 = vst.msk [vmem:[#allocation2 + $0x90] sm:$0xff] %vm439_vm0, %v2826_v0  ;;  %459 = vst.msk [vmem:[#allocation2 + $0x98] sm:$0xff] %vm439_vm0, %v2826_v0 }
  0x30   : > { %460 = vst.msk [vmem:[#allocation2 + $0xa0] sm:$0xff] %vm439_vm0, %v2826_v0  ;;  %461 = vst.msk [vmem:[#allocation2 + $0xa8] sm:$0xff] %vm439_vm0, %v2826_v0 }
  0x31   : > { %462 = vst.msk [vmem:[#allocation2 + $0xb0] sm:$0xff] %vm439_vm0, %v2826_v0  ;;  %463 = vst.msk [vmem:[#allocation2 + $0xb8] sm:$0xff] %vm439_vm0, %v2826_v0  ;;  %476 = sbr.rel (%p2186_p4) target bundleno = 569 (0x239), region = 48 }
  0x32   : > { %464 = vst.msk [vmem:[#allocation2 + $0xc0] sm:$0xff] %vm439_vm0, %v2826_v0  ;;  %465 = vst.msk [vmem:[#allocation2 + $0xc8] sm:$0xff] %vm439_vm0, %v2826_v0 }
  0x33   : > { %466 = vst.msk [vmem:[#allocation2 + $0xd0] sm:$0xff] %vm439_vm0, %v2826_v0  ;;  %467 = vst.msk [vmem:[#allocation2 + $0xd8] sm:$0xff] %vm439_vm0, %v2826_v0 }
  0x34   : > { %468 = vst.msk [vmem:[#allocation2 + $0xe0] sm:$0xff] %vm439_vm0, %v2826_v0  ;;  %469 = vst.msk [vmem:[#allocation2 + $0xe8] sm:$0xff] %vm439_vm0, %v2826_v0 }
  0x35   : > { %470 = vst.msk [vmem:[#allocation2 + $0xf0] sm:$0xff] %vm439_vm0, %v2826_v0  ;;  %471 = vst.msk [vmem:[#allocation2 + $0xf8] sm:$0xff] %vm439_vm0, %v2826_v0 }
  0x36   : > { %v512_v1 = vld [vmem:[%s395_s9 + $0x18] sm:$0xff]  ;;  %v511_v2 = vld [vmem:[%s395_s9 + $0x10] sm:$0xff]  ;;  %v510_v3 = vld [vmem:[%s395_s9 + $0x8] sm:$0xff]  ;;  %vm1360_vm1 = vcmask 523264  }
  0x37   : > { %2432 = vmatprep.subr.mxu0 %v512_v1  ;;  %2608 = vmatprep.subr.mxu1 %v512_v1  ;;  %v509_v4 = vld [vmem:[%s395_s9] sm:$0xff]  ;;  %v2984_v7 = vld [vmem:[%s2948_s22 + $0x8] sm:$0xff]  ;;  %v516_v9 = vld [vmem:[%s2970_s15 + $0x18] sm:$0xff] }
  0x38   : > { %2433 = vmatpush3.msra.mxu0 %v512_v1  ;;  %2612 = vmatpush3.msra.mxu1 %v512_v1  ;;  %v2978_v5 = vld [vmem:[%s2948_s22] sm:$0xff]  ;;  %v2987_v8 = vld [vmem:[%s2948_s22 + $0x88] sm:$0xff]  ;;  %v2991_v10 = vld [vmem:[%s2948_s22 + $0x10] sm:$0xff] }
  0x39   : > { %2434 = vmatprep.subr.mxu0 %v511_v2  ;;  %2609 = vmatprep.subr.mxu1 %v511_v2  ;;  %v2981_v6 = vld [vmem:[%s2948_s22 + $0x80] sm:$0xff]  ;;  %v2998_v11 = vld [vmem:[%s2948_s22 + $0x90] sm:$0xff]  ;;  %v3008_v13 = vld [vmem:[%s2948_s22 + $0x18] sm:$0xff] }
  0x3a   : > { %2435 = vmatpush3.msra.mxu0 %v511_v2  ;;  %2613 = vmatpush3.msra.mxu1 %v511_v2  ;;  %v515_v12 = vld [vmem:[%s2970_s15 + $0x10] sm:$0xff]  ;;  %v3011_v14 = vld [vmem:[%s2948_s22 + $0x98] sm:$0xff]  ;;  %v481_v15 = vld [vmem:[%s2948_s22 + $0x20] sm:$0xff] }
  0x3b   : > { %2436 = vmatprep.subr.mxu0 %v510_v3  ;;  %2610 = vmatprep.subr.mxu1 %v510_v3  ;;  %v3017_v16 = vld [vmem:[%s2948_s22 + $0xa0] sm:$0xff]  ;;  %v514_v17 = vld [vmem:[%s2970_s15 + $0x8] sm:$0xff]  ;;  %v483_v20 = vld [vmem:[%s2948_s22 + $0x30] sm:$0xff] }
  0x3c   : > { %2437 = vmatpush3.msra.mxu0 %v510_v3  ;;  %2614 = vmatpush3.msra.mxu1 %v510_v3  ;;  %v482_v18 = vld [vmem:[%s2948_s22 + $0x28] sm:$0xff]  ;;  %v3033_v21 = vld [vmem:[%s2948_s22 + $0xb0] sm:$0xff]  ;;  %v513_v22 = vld [vmem:[%s2970_s15] sm:$0xff] }
  0x3d   : > { %2438 = vmatprep.subr.mxu0 %v509_v4  ;;  %2611 = vmatprep.subr.mxu1 %v509_v4  ;;  %v3029_v19 = vld [vmem:[%s2948_s22 + $0xa8] sm:$0xff]  ;;  %v484_v23 = vld [vmem:[%s2948_s22 + $0x38] sm:$0xff]  ;;  %v485_v25 = vld [vmem:[%s2948_s22 + $0x40] sm:$0xff] }
  0x3e   : > { %2439 = vmatpush3.msra.mxu0 %v509_v4  ;;  %2615 = vmatpush3.msra.mxu1 %v509_v4  ;;  %v500_v24 = vld [vmem:[%s2948_s22 + $0xb8] sm:$0xff]  ;;  %v501_v26 = vld [vmem:[%s2948_s22 + $0xc0] sm:$0xff]  ;;  %v486_v27 = vld [vmem:[%s2948_s22 + $0x48] sm:$0xff] }
  0x3f   : > { %2440 = vmatprep.mubr.msk.f32.mxu0 %vm439_vm0, %v2978_v5  ;;  %2464 = vmatprep.mubr.msk.f32.mxu1 %vm439_vm0, %v2981_v6  ;;  %v502_v28 = vld [vmem:[%s2948_s22 + $0xc8] sm:$0xff]  ;;  %v487_v29 = vld [vmem:[%s2948_s22 + $0x50] sm:$0xff]  ;;  %v488_v31 = vld [vmem:[%s2948_s22 + $0x58] sm:$0xff] }
  0x40   : > { %2441 = vmatmul.mubr.msk.f32.vlgmr.msra.gmra.mxu0 %vm439_vm0, %v2984_v7  ;;  %2465 = vmatmul.mubr.msk.f32.vlgmr.msra.gmra.mxu1 %vm439_vm0, %v2987_v8  ;;  %v503_v30 = vld [vmem:[%s2948_s22 + $0xd0] sm:$0xff]  ;;  %v504_v32 = vld [vmem:[%s2948_s22 + $0xd8] sm:$0xff]  ;;  %v489_v33 = vld [vmem:[%s2948_s22 + $0x60] sm:$0xff] }
  0x41   : > { %2488 = vmatprep.subr.mxu1 %v516_v9  ;;  %2443 = vmatprep.mubr.msk.f32.mxu0 %vm439_vm0, %v2991_v10  ;;  %v505_v34 = vld [vmem:[%s2948_s22 + $0xe0] sm:$0xff]  ;;  %v490_v35 = vld [vmem:[%s2948_s22 + $0x68] sm:$0xff]  ;;  %v491_v37 = vld [vmem:[%s2948_s22 + $0x70] sm:$0xff] }
  0x42   : > { %2489 = vmatpush3.msra.mxu1 %v516_v9  ;;  %2467 = vmatprep.mubr.msk.f32.mxu1 %vm439_vm0, %v2998_v11  ;;  %v506_v36 = vld [vmem:[%s2948_s22 + $0xe8] sm:$0xff]  ;;  %v507_v38 = vld [vmem:[%s2948_s22 + $0xf0] sm:$0xff]  ;;  %v492_v39 = vld [vmem:[%s2948_s22 + $0x78] sm:$0xff] }
  0x43   : > { %2490 = vmatprep.subr.mxu1 %v515_v12  ;;  %v508_v40 = vld [vmem:[%s2948_s22 + $0xf8] sm:$0xff]  ;;  %v523_v42 = vld [vmem:[%s2975_s19 + $0x30] sm:$0xff]  ;;  %v522_v43 = vld [vmem:[%s2975_s19 + $0x28] sm:$0xff] }
  0x44   : > { %2444 = vmatmul.mubr.msk.f32.gmra.mxu0 %vm439_vm0, %v3008_v13  ;;  %2468 = vmatmul.mubr.msk.f32.gmra.mxu1 %vm439_vm0, %v3011_v14  ;;  %v524_v41 = vld [vmem:[%s2975_s19 + $0x38] sm:$0xff]  ;;  %v521_v44 = vld [vmem:[%s2975_s19 + $0x20] sm:$0xff]  ;;  %v519_v46 = vld [vmem:[%s2975_s19 + $0x10] sm:$0xff] }
  0x45   : > { %2446 = vmatprep.mubr.msk.f32.mxu0 %vm439_vm0, %v481_v15  ;;  %2470 = vmatprep.mubr.msk.f32.mxu1 %vm439_vm0, %v3017_v16  ;;  %v520_v45 = vld [vmem:[%s2975_s19 + $0x18] sm:$0xff]  ;;  %v518_v47 = vld [vmem:[%s2975_s19 + $0x8] sm:$0xff]  ;;  %v517_v48 = vld [vmem:[%s2975_s19] sm:$0xff] }
  0x46   : > { %2491 = vmatpush3.msra.mxu1 %v515_v12  ;;  %2544 = vmatprep.subr.mxu0 %v524_v41 }
  0x47   : > { %2492 = vmatprep.subr.mxu1 %v514_v17  ;;  %2545 = vmatpush3.msra.mxu0 %v524_v41 }
  0x48   : > { %2447 = vmatmul.mubr.msk.f32.gmra.mxu0 %vm439_vm0, %v482_v18  ;;  %2471 = vmatmul.mubr.msk.f32.gmra.mxu1 %vm439_vm0, %v3029_v19 }
  0x49   : > { %2449 = vmatprep.mubr.msk.f32.mxu0 %vm439_vm0, %v483_v20  ;;  %2473 = vmatprep.mubr.msk.f32.mxu1 %vm439_vm0, %v3033_v21 }
  0x4a   : > { %2493 = vmatpush3.msra.mxu1 %v514_v17  ;;  %2546 = vmatprep.subr.mxu0 %v523_v42 }
  0x4b   : > { %2494 = vmatprep.subr.mxu1 %v513_v22  ;;  %2547 = vmatpush3.msra.mxu0 %v523_v42 }
  0x4c   : > { %2450 = vmatmul.mubr.msk.f32.gmra.mxu0 %vm439_vm0, %v484_v23  ;;  %2474 = vmatmul.mubr.msk.f32.gmra.mxu1 %vm439_vm0, %v500_v24 }
  0x4d   : > { %2452 = vmatprep.mubr.msk.f32.mxu0 %vm439_vm0, %v485_v25  ;;  %2476 = vmatprep.mubr.msk.f32.mxu1 %vm439_vm0, %v501_v26 }
  0x4e   : > { %2495 = vmatpush3.msra.mxu1 %v513_v22  ;;  %2548 = vmatprep.subr.mxu0 %v522_v43 }
  0x4f   : > { %2549 = vmatpush3.msra.mxu0 %v522_v43 }
  0x50   : > { %2453 = vmatmul.mubr.msk.f32.gmra.mxu0 %vm439_vm0, %v486_v27  ;;  %2477 = vmatmul.mubr.msk.f32.gmra.mxu1 %vm439_vm0, %v502_v28 }
  0x51   : > { %2455 = vmatprep.mubr.msk.f32.mxu0 %vm439_vm0, %v487_v29  ;;  %2479 = vmatprep.mubr.msk.f32.mxu1 %vm439_vm0, %v503_v30 }
  0x52   : > { %2550 = vmatprep.subr.mxu0 %v521_v44 }
  0x53   : > { %2551 = vmatpush3.msra.mxu0 %v521_v44 }
  0x54   : > { %2456 = vmatmul.mubr.msk.f32.gmra.mxu0 %vm439_vm0, %v488_v31  ;;  %2480 = vmatmul.mubr.msk.f32.gmra.mxu1 %vm439_vm0, %v504_v32 }
  0x55   : > { %2458 = vmatprep.mubr.msk.f32.mxu0 %vm439_vm0, %v489_v33  ;;  %2482 = vmatprep.mubr.msk.f32.mxu1 %vm439_vm0, %v505_v34 }
  0x56   : > { %2552 = vmatprep.subr.mxu0 %v520_v45 }
  0x57   : > { %2553 = vmatpush3.msra.mxu0 %v520_v45 }
  0x58   : > { %2459 = vmatmul.mubr.msk.f32.gmra.mxu0 %vm439_vm0, %v490_v35  ;;  %2483 = vmatmul.mubr.msk.f32.gmra.mxu1 %vm439_vm0, %v506_v36 }
  0x59   : > { %2461 = vmatprep.mubr.msk.f32.mxu0 %vm439_vm0, %v491_v37  ;;  %2485 = vmatprep.mubr.msk.f32.mxu1 %vm439_vm0, %v507_v38 }
  0x5a   : > { %2554 = vmatprep.subr.mxu0 %v519_v46 }
  0x5b   : > { %2555 = vmatpush3.msra.mxu0 %v519_v46 }
  0x5c   : > { %2462 = vmatmul.mubr.msk.f32.gmra.mxu0 %vm439_vm0, %v492_v39  ;;  %2486 = vmatmul.mubr.msk.f32.gmra.mxu1 %vm439_vm0, %v508_v40 }
  0x5d   : > { %2496 = vmatprep.mubr.msk.f32.mxu1 %vm439_vm0, %v2978_v5  ;;  %2556 = vmatprep.subr.mxu0 %v518_v47 }
  0x5e   : > { %2557 = vmatpush3.msra.mxu0 %v518_v47 }
  0x5f   : > { %2558 = vmatprep.subr.mxu0 %v517_v48 }
  0x60   : > { %2497 = vmatmul.mubr.msk.f32.vlgmr.msra.gmra.mxu1 %vm439_vm0, %v2984_v7  ;;  %2559 = vmatpush3.msra.mxu0 %v517_v48 }
  0x61   : > { %2499 = vmatprep.mubr.msk.f32.mxu1 %vm439_vm0, %v2991_v10 }
  0x64   : > { %2500 = vmatmul.mubr.msk.f32.gmra.mxu1 %vm439_vm0, %v3008_v13 }
  0x65   : > { %2502 = vmatprep.mubr.msk.f32.mxu1 %vm439_vm0, %v481_v15 }
  0x68   : > { %2503 = vmatmul.mubr.msk.f32.gmra.mxu1 %vm439_vm0, %v482_v18 }
  0x69   : > { %2505 = vmatprep.mubr.msk.f32.mxu1 %vm439_vm0, %v483_v20 }
  0x6c   : > { %2506 = vmatmul.mubr.msk.f32.gmra.mxu1 %vm439_vm0, %v484_v23 }
  0x6d   : > { %2508 = vmatprep.mubr.msk.f32.mxu1 %vm439_vm0, %v485_v25 }
  0x70   : > { %2509 = vmatmul.mubr.msk.f32.gmra.mxu1 %vm439_vm0, %v486_v27 }
  0x71   : > { %2511 = vmatprep.mubr.msk.f32.mxu1 %vm439_vm0, %v487_v29 }
  0x74   : > { %2512 = vmatmul.mubr.msk.f32.gmra.mxu1 %vm439_vm0, %v488_v31 }
  0x75   : > { %2514 = vmatprep.mubr.msk.f32.mxu1 %vm439_vm0, %v489_v33 }
  0x78   : > { %2515 = vmatmul.mubr.msk.f32.gmra.mxu1 %vm439_vm0, %v490_v35 }
  0x79   : > { %2517 = vmatprep.mubr.msk.f32.mxu1 %vm439_vm0, %v491_v37 }
  0x7c   : > { %2518 = vmatmul.mubr.msk.f32.gmra.mxu1 %vm439_vm0, %v492_v39 }
  0x7d   : > { %2520 = vmatprep.mubr.msk.f32.mxu1 %vm439_vm0, %v2981_v6 }
  0x80   : > { %2521 = vmatmul.mubr.msk.f32.gmra.mxu1 %vm439_vm0, %v2987_v8 }
  0x81   : > { %2523 = vmatprep.mubr.msk.f32.mxu1 %vm439_vm0, %v2998_v11 }
  0x84   : > { %2524 = vmatmul.mubr.msk.f32.gmra.mxu1 %vm439_vm0, %v3011_v14 }
  0x85   : > { %2526 = vmatprep.mubr.msk.f32.mxu1 %vm439_vm0, %v3017_v16 }
  0x88   : > { %2527 = vmatmul.mubr.msk.f32.gmra.mxu1 %vm439_vm0, %v3029_v19 }
  0x89   : > { %2529 = vmatprep.mubr.msk.f32.mxu1 %vm439_vm0, %v3033_v21 }
  0x8c   : > { %2530 = vmatmul.mubr.msk.f32.gmra.mxu1 %vm439_vm0, %v500_v24 }
  0x8d   : > { %2532 = vmatprep.mubr.msk.f32.mxu1 %vm439_vm0, %v501_v26 }
  0x90   : > { %2533 = vmatmul.mubr.msk.f32.gmra.mxu1 %vm439_vm0, %v502_v28 }
  0x91   : > { %2535 = vmatprep.mubr.msk.f32.mxu1 %vm439_vm0, %v503_v30 }
  0x94   : > { %2536 = vmatmul.mubr.msk.f32.gmra.mxu1 %vm439_vm0, %v504_v32 }
  0x95   : > { %2538 = vmatprep.mubr.msk.f32.mxu1 %vm439_vm0, %v505_v34 }
  0x98   : > { %2539 = vmatmul.mubr.msk.f32.gmra.mxu1 %vm439_vm0, %v506_v36 }
  0x99   : > { %2541 = vmatprep.mubr.msk.f32.mxu1 %vm439_vm0, %v507_v38 }
  0x9c   : > { %2542 = vmatmul.mubr.msk.f32.gmra.mxu1 %vm439_vm0, %v508_v40 }
 0x100   : > { %v3129_v49 = vpop.f32.mrf.mxu0  ;;  %v3131_v50 = vpop.f32.mrf.mxu1 }
 0x101   : > { %v2220_v51 = vmul.f32 -1.442695, %v3129_v49  ;;  %v2236_v40 = vmul.f32 -1.442695, %v3131_v50 }
 0x102   : > { %v3134_v52 = vpop.f32.mrf.mxu0  ;;  %v3136_v53 = vpop.f32.mrf.mxu1 }
 0x103   : > { %2644 = vpow2.f32 %v2220_v51  ;;  %v2219_v54 = vmul.f32 -1.442695, %v3134_v52 }
 0x104   : > { %v3139_v55 = vpop.f32.mrf.mxu0  ;;  %v3141_v56 = vpop.f32.mrf.mxu1 }
 0x105   : > { %2646 = vpow2.f32 %v2219_v54  ;;  %v2222_v57 = vmul.f32 -1.442695, %v3139_v55  ;;  %v2235_v54 = vmul.f32 -1.442695, %v3136_v53 }
 0x106   : > { %v3144_v58 = vpop.f32.mrf.mxu0  ;;  %v3146_v59 = vpop.f32.mrf.mxu1 }
 0x107   : > { %2648 = vpow2.f32 %v2222_v57  ;;  %v2221_v60 = vmul.f32 -1.442695, %v3144_v58 }
 0x108   : > { %v3149_v61 = vpop.f32.mrf.mxu0  ;;  %v3151_v62 = vpop.f32.mrf.mxu1 }
 0x109   : > { %2650 = vpow2.f32 %v2221_v60  ;;  %v2224_v63 = vmul.f32 -1.442695, %v3149_v61 }
 0x10a   : > { %v3154_v0 = vpop.f32.mrf.mxu0  ;;  %v3156_v1 = vpop.f32.mrf.mxu1 }
 0x10b   : > { %2652 = vpow2.f32 %v2224_v63  ;;  %v2223_v2 = vmul.f32 -1.442695, %v3154_v0 }
 0x10c   : > { %v3159_v3 = vpop.f32.mrf.mxu0  ;;  %v3161_v4 = vpop.f32.mrf.mxu1 }
 0x10d   : > { %2654 = vpow2.f32 %v2223_v2  ;;  %v2226_v5 = vmul.f32 -1.442695, %v3159_v3 }
 0x10e   : > { %v3164_v6 = vpop.f32.mrf.mxu0  ;;  %v3166_v7 = vpop.f32.mrf.mxu1 }
 0x10f   : > { %2656 = vpow2.f32 %v2226_v5  ;;  %v2225_v8 = vmul.f32 -1.442695, %v3164_v6 }
 0x110   : > { %v2645_v9 = vpop.eup %2644  ;;  %v3169_v10 = vpop.f32.mrf.mxu0 }
 0x111   : > { %v3171_v11 = vpop.f32.mrf.mxu1  ;;  %v944_v12 = vadd.f32 1.0, %v2645_v9  ;;  %2658 = vpow2.f32 %v2225_v8  ;;  %v2228_v38 = vmul.f32 -1.442695, %v3169_v10 }
 0x112   : > { %v2647_v13 = vpop.eup %2646  ;;  %v3173_v14 = vpop.f32.mrf.mxu0 }
 0x113   : > { %v3175_v15 = vpop.f32.mrf.mxu1  ;;  %2660 = vrcp.f32 %v944_v12  ;;  %v943_v16 = vadd.f32 1.0, %v2647_v13  ;;  %v2227_v42 = vmul.f32 -1.442695, %v3173_v14 }
 0x114   : > { %v2649_v17 = vpop.eup %2648  ;;  %v3179_v21 = vpop.f32.mrf.mxu0 }
 0x115   : > { %v3177_v18 = vpop.f32.mrf.mxu1  ;;  %2662 = vrcp.f32 %v943_v16  ;;  %v946_v19 = vadd.f32 1.0, %v2649_v17  ;;  %v2230_v48 = vmul.f32 -1.442695, %v3179_v21  ;;  %v2238_v16 = vmul.f32 -1.442695, %v3141_v56 }
 0x116   : > { %v2651_v20 = vpop.eup %2650  ;;  %v3185_v28 = vpop.f32.mrf.mxu0 }
 0x117   : > { %v3181_v22 = vpop.f32.mrf.mxu1  ;;  %2664 = vrcp.f32 %v946_v19  ;;  %v945_v23 = vadd.f32 1.0, %v2651_v20  ;;  %v2229_v60 = vmul.f32 -1.442695, %v3185_v28 }
 0x118   : > { %v2653_v24 = vpop.eup %2652  ;;  %v3191_v35 = vpop.f32.mrf.mxu0 }
 0x119   : > { %v3183_v25 = vpop.f32.mrf.mxu1  ;;  %2666 = vrcp.f32 %v945_v23  ;;  %v948_v26 = vadd.f32 1.0, %v2653_v24  ;;  %v2232_v12 = vmul.f32 -1.442695, %v3191_v35  ;;  %v2237_v23 = vmul.f32 -1.442695, %v3146_v59 }
 0x11a   : > { %v2655_v27 = vpop.eup %2654  ;;  %v3199_v45 = vpop.f32.mrf.mxu0 }
 0x11b   : > { %v3187_v29 = vpop.f32.mrf.mxu1  ;;  %2668 = vrcp.f32 %v948_v26  ;;  %v947_v30 = vadd.f32 1.0, %v2655_v27 }
 0x11c   : > { %v2657_v31 = vpop.eup %2656  ;;  %v3206_v5 = vpop.f32.mrf.mxu0 }
 0x11d   : > { %v3189_v32 = vpop.f32.mrf.mxu1  ;;  %2670 = vrcp.f32 %v947_v30  ;;  %v950_v33 = vadd.f32 1.0, %v2657_v31  ;;  %v2234_v31 = vmul.f32 -1.442695, %v3206_v5 }
 0x11e   : > { %v2659_v34 = vpop.eup %2658  ;;  %v3216_v24 = vpop.f32.mrf.mxu0 }
 0x11f   : > { %v3193_v36 = vpop.f32.mrf.mxu1  ;;  %2672 = vrcp.f32 %v950_v33  ;;  %v949_v37 = vadd.f32 1.0, %v2659_v34  ;;  %v2240_v34 = vmul.f32 -1.442695, %v3151_v62 }
 0x120   : > { %v2661_v39 = vpop.eup %2660 }
 0x121   : > { %v2498_v41 = vpop.f32.mrf.mxu1  ;;  %2674 = vrcp.f32 %v949_v37  ;;  %v1040_v44 = vmul.f32 %v2661_v39, %v3129_v49 }
 0x122   : > { %v2663_v43 = vpop.eup %2662  ;;  %2676 = vpow2.f32 %v2228_v38 }
 0x123   : > { %v1137_v46 = vpop.f32.mrf.mxu1  ;;  %v1039_v47 = vmul.f32 %v2663_v43, %v3134_v52  ;;  %2678 = vpow2.f32 %v2236_v40  ;;  %v1297_v8 = vmul.f32 %v2498_v41, %v1040_v44 }
 0x124   : > { %v2665_v51 = vpop.eup %2664  ;;  %2680 = vpow2.f32 %v2227_v42 }
 0x125   : > { %v2501_v57 = vpop.f32.mrf.mxu1  ;;  %v1296_v63 = vmul.f32 %v1137_v46, %v1039_v47  ;;  %v1042_v49 = vmul.f32 %v2665_v51, %v3139_v55  ;;  %2682 = vpow2.f32 %v2230_v48  ;;  %v2231_v55 = vmul.f32 -1.442695, %v3199_v45 }
 0x126   : > { %v2667_v2 = vpop.eup %2666  ;;  %2684 = vpow2.f32 %v2235_v54  ;;  %v2242_v46 = vmul.f32 -1.442695, %v3161_v4 }
 0x127   : > { %v1147_v52 = vpop.f32.mrf.mxu1  ;;  %v1041_v9 = vmul.f32 %v2667_v2, %v3144_v58  ;;  %2560 = vmatprep.mubr.msk.f32.mxu0 %vm1360_vm1, %v1296_v63  ;;  %2686 = vpow2.f32 %v2229_v60  ;;  %v1299_v26 = vmul.f32 %v2501_v57, %v1042_v49  ;;  %v2241_v57 = vmul.f32 -1.442695, %v3166_v7 }
 0x128   : > { %v2669_v13 = vpop.eup %2668  ;;  %2561 = vmatmul.mubr.msk.f32.vlgmr.msra.gmra.mxu0 %vm1360_vm1, %v1297_v8  ;;  %2688 = vpow2.f32 %v2232_v12 }
 0x129   : > { %v2504_v17 = vpop.f32.mrf.mxu1  ;;  %v1298_v19 = vmul.f32 %v1147_v52, %v1041_v9  ;;  %v1044_v58 = vmul.f32 %v2669_v13, %v3149_v61  ;;  %2690 = vpow2.f32 %v2238_v16  ;;  %v2233_v61 = vmul.f32 -1.442695, %v3216_v24 }
 0x12a   : > { %v2671_v20 = vpop.eup %2670  ;;  %2692 = vpow2.f32 %v2231_v55  ;;  %v2243_v13 = vmul.f32 -1.442695, %v3175_v15 }
 0x12b   : > { %v1157_v27 = vpop.f32.mrf.mxu1  ;;  %v1043_v30 = vmul.f32 %v2671_v20, %v3154_v0  ;;  %2563 = vmatprep.mubr.msk.f32.mxu0 %vm1360_vm1, %v1298_v19  ;;  %2694 = vpow2.f32 %v2237_v23  ;;  %v2239_v0 = vmul.f32 -1.442695, %v3156_v1  ;;  %v1301_v41 = vmul.f32 %v2504_v17, %v1044_v58 }
 0x12c   : > { %v2673_v33 = vpop.eup %2672  ;;  %2564 = vmatmul.mubr.msk.f32.gmra.mxu0 %vm1360_vm1, %v1299_v26  ;;  %2696 = vpow2.f32 %v2234_v31 }
 0x12d   : > { %v2507_v37 = vpop.f32.mrf.mxu1  ;;  %v1300_v38 = vmul.f32 %v1157_v27, %v1043_v30  ;;  %v1046_v40 = vmul.f32 %v2673_v33, %v3159_v3  ;;  %2698 = vpow2.f32 %v2240_v34  ;;  %v2245_v27 = vmul.f32 -1.442695, %v3181_v22 }
 0x12e   : > { %v2675_v39 = vpop.eup %2674  ;;  %2700 = vpow2.f32 %v2233_v61 }
 0x12f   : > { %v1167_v42 = vpop.f32.mrf.mxu1  ;;  %v1045_v43 = vmul.f32 %v2675_v39, %v3164_v6  ;;  %2566 = vmatprep.mubr.msk.f32.mxu0 %vm1360_vm1, %v1300_v38  ;;  %v2677_v44 = vpop.eup %2676  ;;  %2702 = vpow2.f32 %v2239_v0  ;;  %v1303_v6 = vmul.f32 %v2507_v37, %v1046_v40  ;;  %v2244_v37 = vmul.f32 -1.442695, %v3171_v11 }
 0x130   : > { %2567 = vmatmul.mubr.msk.f32.gmra.mxu0 %vm1360_vm1, %v1301_v41  ;;  %v2679_v48 = vpop.eup %2678  ;;  %v952_v51 = vadd.f32 1.0, %v2677_v44 }
 0x131   : > { %v3229_v47 = vpop.f32.mrf.mxu1  ;;  %v1302_v54 = vmul.f32 %v1167_v42, %v1045_v43  ;;  %v2681_v3 = vpop.eup %2680  ;;  %v960_v49 = vadd.f32 1.0, %v2679_v48  ;;  %v2247_v43 = vmul.f32 -1.442695, %v3187_v29  ;;  %v2246_v48 = vmul.f32 -1.442695, %v3177_v18 }
 0x132   : > { %2704 = vrcp.f32 %v952_v51  ;;  %v951_v63 = vadd.f32 1.0, %v2681_v3  ;;  %v2683_v2 = vpop.eup %2682 }
 0x133   : > { %v3233_v60 = vpop.f32.mrf.mxu1  ;;  %2569 = vmatprep.mubr.msk.f32.mxu0 %vm1360_vm1, %v1302_v54  ;;  %2706 = vpow2.f32 %v2242_v46  ;;  %v2685_v52 = vpop.eup %2684  ;;  %v954_v9 = vadd.f32 1.0, %v2683_v2 }
 0x134   : > { %2570 = vmatmul.mubr.msk.f32.gmra.mxu0 %vm1360_vm1, %v1303_v6  ;;  %2708 = vrcp.f32 %v951_v63  ;;  %v2687_v12 = vpop.eup %2686  ;;  %v959_v19 = vadd.f32 1.0, %v2685_v52 }
 0x135   : > { %v3236_v8 = vpop.f32.mrf.mxu1  ;;  %2710 = vpow2.f32 %v2241_v57  ;;  %v953_v17 = vadd.f32 1.0, %v2687_v12  ;;  %v2689_v55 = vpop.eup %2688 }
 0x136   : > { %2712 = vrcp.f32 %v954_v9  ;;  %v2691_v23 = vpop.eup %2690  ;;  %v956_v58 = vadd.f32 1.0, %v2689_v55  ;;  %v2249_v9 = vmul.f32 -1.442695, %v3193_v36 }
 0x137   : > { %v3240_v16 = vpop.f32.mrf.mxu1  ;;  %2714 = vrcp.f32 %v960_v49  ;;  %v2693_v26 = vpop.eup %2692  ;;  %v962_v3 = vadd.f32 1.0, %v2691_v23 }
 0x138   : > { %2716 = vrcp.f32 %v953_v17  ;;  %v2695_v31 = vpop.eup %2694  ;;  %v955_v33 = vadd.f32 1.0, %v2693_v26 }
 0x139   : > { %v3242_v20 = vpop.f32.mrf.mxu1  ;;  %2718 = vpow2.f32 %v2243_v13  ;;  %v2697_v34 = vpop.eup %2696  ;;  %v961_v40 = vadd.f32 1.0, %v2695_v31  ;;  %v2248_v13 = vmul.f32 -1.442695, %v3183_v25 }
 0x13a   : > { %2720 = vrcp.f32 %v956_v58  ;;  %v2699_v38 = vpop.eup %2698  ;;  %v958_v39 = vadd.f32 1.0, %v2697_v34 }
 0x13b   : > { %v3245_v30 = vpop.f32.mrf.mxu1  ;;  %2722 = vrcp.f32 %v959_v19  ;;  %v2701_v0 = vpop.eup %2700  ;;  %v964_v23 = vadd.f32 1.0, %v2699_v38 }
 0x13c   : > { %2724 = vrcp.f32 %v955_v33  ;;  %v2703_v42 = vpop.eup %2702  ;;  %v957_v44 = vadd.f32 1.0, %v2701_v0 }
 0x13d   : > { %v3248_v61 = vpop.f32.mrf.mxu1  ;;  %2726 = vpow2.f32 %v2245_v27  ;;  %v963_v6 = vadd.f32 1.0, %v2703_v42 }
 0x13e   : > { %2728 = vrcp.f32 %v958_v39 }
 0x13f   : > { %v3250_v41 = vpop.f32.mrf.mxu1  ;;  %v2705_v46 = vpop.eup %2704  ;;  %2730 = vpow2.f32 %v2244_v37 }
 0x140   : > { %v2707_v54 = vpop.eup %2706  ;;  %2732 = vrcp.f32 %v957_v44  ;;  %v1048_v63 = vmul.f32 %v2705_v46, %v3169_v10 }
 0x141   : > { %v3254_v51 = vpop.f32.mrf.mxu1  ;;  %v2709_v57 = vpop.eup %2708  ;;  %2734 = vrcp.f32 %v961_v40  ;;  %v966_v46 = vadd.f32 1.0, %v2707_v54 }
 0x142   : > { %v2711_v49 = vpop.eup %2710  ;;  %v1047_v52 = vmul.f32 %v2709_v57, %v3173_v14  ;;  %2736 = vpow2.f32 %v2247_v43  ;;  %v1305_v14 = vmul.f32 %v3229_v47, %v1048_v63 }
 0x143   : > { %v3257_v2 = vpop.f32.mrf.mxu1  ;;  %v2713_v12 = vpop.eup %2712  ;;  %2738 = vpow2.f32 %v2246_v48  ;;  %v965_v31 = vadd.f32 1.0, %v2711_v49 }
 0x144   : > { %v3264_v55 = vpop.eup %2714  ;;  %2740 = vrcp.f32 %v962_v3  ;;  %v1304_v19 = vmul.f32 %v3233_v60, %v1047_v52  ;;  %v1050_v58 = vmul.f32 %v2713_v12, %v3179_v21  ;;  %v2250_v60 = vmul.f32 -1.442695, %v3189_v32 }
 0x145   : > { %v3262_v17 = vpop.f32.mrf.mxu1  ;;  %v2717_v10 = vpop.eup %2716  ;;  %2742 = vrcp.f32 %v963_v6 }
 0x146   : > { %v2719_v27 = vpop.eup %2718  ;;  %v1049_v33 = vmul.f32 %v2717_v10, %v3185_v28  ;;  %2744 = vpow2.f32 %v2249_v9  ;;  %2572 = vmatprep.mubr.msk.f32.mxu0 %vm1360_vm1, %v1304_v19  ;;  %v1307_v28 = vmul.f32 %v3236_v8, %v1050_v58 }
 0x147   : > { %v3269_v26 = vpop.f32.mrf.mxu1  ;;  %v2721_v34 = vpop.eup %2720  ;;  %2746 = vpow2.f32 %v2248_v13  ;;  %2573 = vmatmul.mubr.msk.f32.gmra.mxu0 %vm1360_vm1, %v1305_v14  ;;  %v967_v42 = vadd.f32 1.0, %v2719_v27  ;;  %v1056_v14 = vmul.f32 %v3264_v55, %v3131_v50 }
 0x148   : > { %v2723_v21 = vpop.eup %2722  ;;  %v1306_v47 = vmul.f32 %v3240_v16, %v1049_v33  ;;  %2748 = vrcp.f32 %v964_v23  ;;  %v1052_v39 = vmul.f32 %v2721_v34, %v3191_v35 }
 0x149   : > { %v3275_v37 = vpop.f32.mrf.mxu1  ;;  %v2725_v38 = vpop.eup %2724  ;;  %2750 = vrcp.f32 %v965_v31 }
 0x14a   : > { %v2727_v40 = vpop.eup %2726  ;;  %v1051_v43 = vmul.f32 %v2725_v38, %v3199_v45  ;;  %2575 = vmatprep.mubr.msk.f32.mxu0 %vm1360_vm1, %v1306_v47  ;;  %2752 = vpow2.f32 %v2250_v60  ;;  %v1309_v57 = vmul.f32 %v3242_v20, %v1052_v39  ;;  %v1055_v45 = vmul.f32 %v2723_v21, %v3136_v53 }
 0x14b   : > { %v1237_v0 = vpop.f32.mrf.mxu1  ;;  %v2729_v44 = vpop.eup %2728  ;;  %2576 = vmatmul.mubr.msk.f32.gmra.mxu0 %vm1360_vm1, %v1307_v28  ;;  %2754 = vrcp.f32 %v967_v42  ;;  %v969_v49 = vadd.f32 1.0, %v2727_v40 }
 0x14c   : > { %v2731_v48 = vpop.eup %2730  ;;  %v1308_v35 = vmul.f32 %v3245_v30, %v1051_v43  ;;  %v1054_v8 = vmul.f32 %v2729_v44, %v3206_v5  ;;  %2756 = vrcp.f32 %v966_v46  ;;  %v1312_v12 = vmul.f32 %v3257_v2, %v1055_v45 }
 0x14d   : > { %v3283_v16 = vpop.f32.mrf.mxu1  ;;  %v2733_v3 = vpop.eup %2732  ;;  %v968_v9 = vadd.f32 1.0, %v2731_v48  ;;  %2758 = vrcp.f32 %v969_v49  ;;  %v1313_v2 = vmul.f32 %v3254_v51, %v1056_v14 }
 0x14e   : > { %v2735_v63 = vpop.eup %2734  ;;  %v1053_v54 = vmul.f32 %v2733_v3, %v3216_v24  ;;  %2578 = vmatprep.mubr.msk.f32.mxu0 %vm1360_vm1, %v1308_v35  ;;  %v1311_v53 = vmul.f32 %v3248_v61, %v1054_v8 }
 0x14f   : > { %v1247_v6 = vpop.f32.mrf.mxu1  ;;  %v2737_v52 = vpop.eup %2736  ;;  %2579 = vmatmul.mubr.msk.f32.gmra.mxu0 %vm1360_vm1, %v1309_v57  ;;  %v1057_v24 = vmul.f32 %v2735_v63, %v3146_v59  ;;  %2760 = vrcp.f32 %v968_v9 }
 0x150   : > { %v2739_v5 = vpop.eup %2738  ;;  %v1310_v20 = vmul.f32 %v3250_v41, %v1053_v54  ;;  %v971_v23 = vadd.f32 1.0, %v2737_v52 }
 0x151   : > { %v3292_v30 = vpop.f32.mrf.mxu1  ;;  %v2741_v13 = vpop.eup %2740  ;;  %v970_v27 = vadd.f32 1.0, %v2739_v5  ;;  %v1314_v61 = vmul.f32 %v3269_v26, %v1057_v24  ;;  %v1330_v24 = vld [vmem:[#allocation2 + $0x10] sm:$0xff] }
 0x152   : > { %v2743_v10 = vpop.eup %2742  ;;  %2581 = vmatprep.mubr.msk.f32.mxu0 %vm1360_vm1, %v1310_v20  ;;  %2762 = vrcp.f32 %v971_v23  ;;  %v1058_v50 = vmul.f32 %v2741_v13, %v3141_v56  ;;  %v1329_v20 = vld [vmem:[#allocation2 + $0x8] sm:$0xff] }
 0x153   : > { %v1257_v19 = vpop.f32.mrf.mxu1  ;;  %v2745_v58 = vpop.eup %2744  ;;  %2582 = vmatmul.mubr.msk.f32.gmra.mxu0 %vm1360_vm1, %v1311_v53  ;;  %v1059_v33 = vmul.f32 %v2743_v10, %v3156_v1  ;;  %2764 = vrcp.f32 %v970_v27  ;;  %v1331_v53 = vld [vmem:[#allocation2 + $0x18] sm:$0xff] }
 0x154   : > { %v2747_v41 = vpop.eup %2746  ;;  %2584 = vmatprep.mubr.msk.f32.mxu0 %vm1360_vm1, %v1312_v12  ;;  %v973_v34 = vadd.f32 1.0, %v2745_v58  ;;  %v1315_v26 = vmul.f32 %v3262_v17, %v1058_v50  ;;  %v1328_v12 = vld [vmem:[#allocation2] sm:$0xff]  ;;  %v1333_v58 = vld [vmem:[#allocation2 + $0x28] sm:$0xff] }
 0x155   : > { %v2537_v59 = vpop.f32.mrf.mxu1  ;;  %v2749_v31 = vpop.eup %2748  ;;  %v972_v55 = vadd.f32 1.0, %v2747_v41  ;;  %v1316_v47 = vmul.f32 %v1237_v0, %v1059_v33  ;;  %v1332_v41 = vld [vmem:[#allocation2 + $0x20] sm:$0xff] }
 0x156   : > { %v2751_v60 = vpop.eup %2750  ;;  %2766 = vrcp.f32 %v973_v34  ;;  %v1060_v39 = vmul.f32 %v2749_v31, %v3151_v62  ;;  %v1334_v34 = vld [vmem:[#allocation2 + $0x30] sm:$0xff] }
 0x157   : > { %2585 = vmatmul.mubr.msk.f32.gmra.mxu0 %vm1360_vm1, %v1313_v2  ;;  %v2753_v21 = vpop.eup %2752  ;;  %v1267_v51 = vpop.f32.mrf.mxu1  ;;  %v1061_v38 = vmul.f32 %v2751_v60, %v3166_v7  ;;  %2768 = vrcp.f32 %v972_v55 }
 0x158   : > { %2587 = vmatprep.mubr.msk.f32.mxu0 %vm1360_vm1, %v1314_v61  ;;  %v2755_v1 = vpop.eup %2754  ;;  %v974_v28 = vadd.f32 1.0, %v2753_v21  ;;  %v1317_v42 = vmul.f32 %v3275_v37, %v1060_v39  ;;  %v1337_v21 = vld [vmem:[#allocation2 + $0x48] sm:$0xff] }
 0x159   : > { %v2757_v56 = vpop.eup %2756  ;;  %v1318_v40 = vmul.f32 %v1247_v6, %v1061_v38  ;;  %v2540_v0 = vpop.f32.mrf.mxu1  ;;  %v1063_v17 = vmul.f32 %v2755_v1, %v3175_v15  ;;  %v1339_v1 = vld [vmem:[#allocation2 + $0x58] sm:$0xff] }
 0x15a   : > { %v2759_v43 = vpop.eup %2758  ;;  %v1062_v7 = vmul.f32 %v2757_v56, %v3161_v4  ;;  %2770 = vrcp.f32 %v974_v28  ;;  %v1338_v56 = vld [vmem:[#allocation2 + $0x50] sm:$0xff] }
 0x15b   : > { %2588 = vmatmul.mubr.msk.f32.gmra.mxu0 %vm1360_vm1, %v1315_v26  ;;  %v1320_v44 = vmul.f32 %v1257_v19, %v1063_v17  ;;  %v1277_v48 = vpop.f32.mrf.mxu1  ;;  %v1065_v35 = vmul.f32 %v2759_v43, %v3181_v22  ;;  %v1336_v26 = vld [vmem:[#allocation2 + $0x40] sm:$0xff] }
 0x15c   : > { %2590 = vmatprep.mubr.msk.f32.mxu0 %vm1360_vm1, %v1316_v47  ;;  %v2761_v62 = vpop.eup %2760  ;;  %v1319_v46 = vmul.f32 %v3283_v16, %v1062_v7  ;;  %v1340_v7 = vld [vmem:[#allocation2 + $0x60] sm:$0xff] }
 0x15d   : > { %v1064_v37 = vmul.f32 %v2761_v62, %v3171_v11  ;;  %v1322_v4 = vmul.f32 %v1267_v51, %v1065_v35  ;;  %v2543_v57 = vpop.f32.mrf.mxu1 }
 0x15f   : > { %2591 = vmatmul.mubr.msk.f32.gmra.mxu0 %vm1360_vm1, %v1317_v42  ;;  %v2763_v3 = vpop.eup %2762  ;;  %v1321_v8 = vmul.f32 %v3292_v30, %v1064_v37  ;;  %v1287_v49 = vpop.f32.mrf.mxu1 }
 0x160   : > { %2593 = vmatprep.mubr.msk.f32.mxu0 %vm1360_vm1, %v1318_v40  ;;  %v2765_v15 = vpop.eup %2764  ;;  %v1067_v6 = vmul.f32 %v2763_v3, %v3187_v29  ;;  %v1342_v3 = vld [vmem:[#allocation2 + $0x70] sm:$0xff] }
 0x161   : > { %v1066_v16 = vmul.f32 %v2765_v15, %v3177_v18 }
 0x162   : > { %v1324_v11 = vmul.f32 %v1277_v48, %v1067_v6  ;;  %v1344_v6 = vld [vmem:[#allocation2 + $0x80] sm:$0xff] }
 0x163   : > { %2594 = vmatmul.mubr.msk.f32.gmra.mxu0 %vm1360_vm1, %v1319_v46  ;;  %v2767_v63 = vpop.eup %2766  ;;  %v1323_v45 = vmul.f32 %v2537_v59, %v1066_v16  ;;  %v1335_v59 = vld [vmem:[#allocation2 + $0x38] sm:$0xff] }
 0x164   : > { %2596 = vmatprep.mubr.msk.f32.mxu0 %vm1360_vm1, %v1320_v44  ;;  %v2769_v22 = vpop.eup %2768  ;;  %v1069_v54 = vmul.f32 %v2767_v63, %v3193_v36  ;;  %v1343_v46 = vld [vmem:[#allocation2 + $0x78] sm:$0xff] }
 0x165   : > { %v1068_v52 = vmul.f32 %v2769_v22, %v3183_v25  ;;  %v1347_v22 = vld [vmem:[#allocation2 + $0x98] sm:$0xff] }
 0x166   : > { %v1326_v29 = vmul.f32 %v1287_v49, %v1069_v54  ;;  %v1346_v49 = vld [vmem:[#allocation2 + $0x90] sm:$0xff] }
 0x167   : > { %2597 = vmatmul.mubr.msk.f32.gmra.mxu0 %vm1360_vm1, %v1321_v8  ;;  %v2771_v9 = vpop.eup %2770  ;;  %v1325_v30 = vmul.f32 %v2540_v0, %v1068_v52  ;;  %v1341_v0 = vld [vmem:[#allocation2 + $0x68] sm:$0xff] }
 0x168   : > { %2599 = vmatprep.mubr.msk.f32.mxu0 %vm1360_vm1, %v1322_v4  ;;  %v1070_v18 = vmul.f32 %v2771_v9, %v3189_v32  ;;  %v1345_v4 = vld [vmem:[#allocation2 + $0x88] sm:$0xff] }
 0x169   : > { %v1349_v9 = vld [vmem:[#allocation2 + $0xa8] sm:$0xff] }
 0x16a   : > { %v1327_v5 = vmul.f32 %v2543_v57, %v1070_v18  ;;  %v1348_v18 = vld [vmem:[#allocation2 + $0xa0] sm:$0xff] }
 0x16b   : > { %2600 = vmatmul.mubr.msk.f32.gmra.mxu0 %vm1360_vm1, %v1323_v45 }
 0x16c   : > { %2602 = vmatprep.mubr.msk.f32.mxu0 %vm1360_vm1, %v1324_v11 }
 0x16f   : > { %2603 = vmatmul.mubr.msk.f32.gmra.mxu0 %vm1360_vm1, %v1325_v30 }
 0x170   : > { %2605 = vmatprep.mubr.msk.f32.mxu0 %vm1360_vm1, %v1326_v29 }
 0x173   : > { %2606 = vmatmul.mubr.msk.f32.gmra.mxu0 %vm1360_vm1, %v1327_v5 }
 0x1e8   : > { %v2562_v36 = vpop.f32.mrf.mxu0 }
 0x1e9   : > { %v1683_v25 = vadd.f32 %v2562_v36, %v1329_v20  ;;  %v1351_v36 = vld [vmem:[#allocation2 + $0xb8] sm:$0xff] }
 0x1ea   : > { %v1523_v13 = vpop.f32.mrf.mxu0 }
 0x1eb   : > { %1715 = vst.msk [vmem:[#allocation2 + $0x8] sm:$0xff] %vm439_vm0, %v1683_v25  ;;  %v1682_v19 = vadd.f32 %v1523_v13, %v1328_v12  ;;  %v1350_v13 = vld [vmem:[#allocation2 + $0xb0] sm:$0xff] }
 0x1ec   : > { %v2565_v10 = vpop.f32.mrf.mxu0 }
 0x1ed   : > { %1714 = vst.msk [vmem:[#allocation2] sm:$0xff] %vm439_vm0, %v1682_v19  ;;  %v1685_v32 = vadd.f32 %v2565_v10, %v1331_v53  ;;  %v1353_v10 = vld [vmem:[#allocation2 + $0xc8] sm:$0xff] }
 0x1ee   : > { %v1533_v23 = vpop.f32.mrf.mxu0 }
 0x1ef   : > { %1717 = vst.msk [vmem:[#allocation2 + $0x18] sm:$0xff] %vm439_vm0, %v1685_v32  ;;  %v1684_v14 = vadd.f32 %v1533_v23, %v1330_v24  ;;  %v1352_v23 = vld [vmem:[#allocation2 + $0xc0] sm:$0xff] }
 0x1f0   : > { %v2568_v27 = vpop.f32.mrf.mxu0 }
 0x1f1   : > { %1716 = vst.msk [vmem:[#allocation2 + $0x10] sm:$0xff] %vm439_vm0, %v1684_v14  ;;  %v1687_v61 = vadd.f32 %v2568_v27, %v1333_v58  ;;  %v1355_v27 = vld [vmem:[#allocation2 + $0xd8] sm:$0xff] }
 0x1f2   : > { %v1543_v2 = vpop.f32.mrf.mxu0 }
 0x1f3   : > { %1719 = vst.msk [vmem:[#allocation2 + $0x28] sm:$0xff] %vm439_vm0, %v1687_v61  ;;  %v1686_v31 = vadd.f32 %v1543_v2, %v1332_v41  ;;  %v1354_v2 = vld [vmem:[#allocation2 + $0xd0] sm:$0xff] }
 0x1f4   : > { %v2571_v33 = vpop.f32.mrf.mxu0 }
 0x1f5   : > { %1718 = vst.msk [vmem:[#allocation2 + $0x20] sm:$0xff] %vm439_vm0, %v1686_v31  ;;  %v1689_v60 = vadd.f32 %v2571_v33, %v1335_v59  ;;  %v1357_v33 = vld [vmem:[#allocation2 + $0xe8] sm:$0xff] }
 0x1f6   : > { %v1553_v50 = vpop.f32.mrf.mxu0 }
 0x1f7   : > { %1721 = vst.msk [vmem:[#allocation2 + $0x38] sm:$0xff] %vm439_vm0, %v1689_v60  ;;  %v1688_v55 = vadd.f32 %v1553_v50, %v1334_v34  ;;  %v1356_v50 = vld [vmem:[#allocation2 + $0xe0] sm:$0xff] }
 0x1f9   : > { %1720 = vst.msk [vmem:[#allocation2 + $0x30] sm:$0xff] %vm439_vm0, %v1688_v55 }
 0x207   : > { %v2574_v47 = vpop.f32.mrf.mxu0 }
 0x208   : > { %v1691_v51 = vadd.f32 %v2574_v47, %v1337_v21  ;;  %v1359_v47 = vld [vmem:[#allocation2 + $0xf8] sm:$0xff] }
 0x209   : > { %v1563_v38 = vpop.f32.mrf.mxu0 }
 0x20a   : > { %1723 = vst.msk [vmem:[#allocation2 + $0x48] sm:$0xff] %vm439_vm0, %v1691_v51  ;;  %v1690_v39 = vadd.f32 %v1563_v38, %v1336_v26  ;;  %v1358_v38 = vld [vmem:[#allocation2 + $0xf0] sm:$0xff] }
 0x20b   : > { %v2577_v28 = vpop.f32.mrf.mxu0 }
 0x20c   : > { %1722 = vst.msk [vmem:[#allocation2 + $0x40] sm:$0xff] %vm439_vm0, %v1690_v39  ;;  %v1693_v40 = vadd.f32 %v2577_v28, %v1339_v1 }
 0x20d   : > { %v1573_v42 = vpop.f32.mrf.mxu0 }
 0x20e   : > { %1725 = vst.msk [vmem:[#allocation2 + $0x58] sm:$0xff] %vm439_vm0, %v1693_v40  ;;  %v1692_v17 = vadd.f32 %v1573_v42, %v1338_v56 }
 0x20f   : > { %v2580_v43 = vpop.f32.mrf.mxu0 }
 0x210   : > { %1724 = vst.msk [vmem:[#allocation2 + $0x50] sm:$0xff] %vm439_vm0, %v1692_v17  ;;  %v1695_v62 = vadd.f32 %v2580_v43, %v1341_v0 }
 0x211   : > { %v1583_v44 = vpop.f32.mrf.mxu0 }
 0x212   : > { %1727 = vst.msk [vmem:[#allocation2 + $0x68] sm:$0xff] %vm439_vm0, %v1695_v62  ;;  %v1694_v48 = vadd.f32 %v1583_v44, %v1340_v7 }
 0x213   : > { %v2583_v35 = vpop.f32.mrf.mxu0 }
 0x214   : > { %1726 = vst.msk [vmem:[#allocation2 + $0x60] sm:$0xff] %vm439_vm0, %v1694_v48  ;;  %v1697_v37 = vadd.f32 %v2583_v35, %v1343_v46 }
 0x215   : > { %v1593_v15 = vpop.f32.mrf.mxu0 }
 0x216   : > { %1729 = vst.msk [vmem:[#allocation2 + $0x78] sm:$0xff] %vm439_vm0, %v1697_v37  ;;  %v1696_v8 = vadd.f32 %v1593_v15, %v1342_v3 }
 0x217   : > { %v2586_v57 = vpop.f32.mrf.mxu0 }
 0x218   : > { %1728 = vst.msk [vmem:[#allocation2 + $0x70] sm:$0xff] %vm439_vm0, %v1696_v8  ;;  %v1699_v63 = vadd.f32 %v2586_v57, %v1345_v4 }
 0x219   : > { %v1603_v16 = vpop.f32.mrf.mxu0 }
 0x21a   : > { %1731 = vst.msk [vmem:[#allocation2 + $0x88] sm:$0xff] %vm439_vm0, %v1699_v63  ;;  %v1698_v11 = vadd.f32 %v1603_v16, %v1344_v6 }
 0x21b   : > { %v2589_v45 = vpop.f32.mrf.mxu0 }
 0x21c   : > { %1730 = vst.msk [vmem:[#allocation2 + $0x80] sm:$0xff] %vm439_vm0, %v1698_v11  ;;  %v1701_v54 = vadd.f32 %v2589_v45, %v1347_v22 }
 0x21d   : > { %v1613_v52 = vpop.f32.mrf.mxu0 }
 0x21e   : > { %1733 = vst.msk [vmem:[#allocation2 + $0x98] sm:$0xff] %vm439_vm0, %v1701_v54  ;;  %v1700_v29 = vadd.f32 %v1613_v52, %v1346_v49 }
 0x21f   : > { %v2592_v30 = vpop.f32.mrf.mxu0 }
 0x220   : > { %1732 = vst.msk [vmem:[#allocation2 + $0x90] sm:$0xff] %vm439_vm0, %v1700_v29  ;;  %v1703_v5 = vadd.f32 %v2592_v30, %v1349_v9 }
 0x221   : > { %v1623_v20 = vpop.f32.mrf.mxu0 }
 0x222   : > { %1735 = vst.msk [vmem:[#allocation2 + $0xa8] sm:$0xff] %vm439_vm0, %v1703_v5  ;;  %v1702_v12 = vadd.f32 %v1623_v20, %v1348_v18 }
 0x223   : > { %v2595_v25 = vpop.f32.mrf.mxu0 }
 0x224   : > { %1734 = vst.msk [vmem:[#allocation2 + $0xa0] sm:$0xff] %vm439_vm0, %v1702_v12  ;;  %v1705_v53 = vadd.f32 %v2595_v25, %v1351_v36 }
 0x225   : > { %v1633_v19 = vpop.f32.mrf.mxu0 }
 0x226   : > { %1737 = vst.msk [vmem:[#allocation2 + $0xb8] sm:$0xff] %vm439_vm0, %v1705_v53  ;;  %v1704_v24 = vadd.f32 %v1633_v19, %v1350_v13 }
 0x227   : > { %v2598_v32 = vpop.f32.mrf.mxu0 }
 0x228   : > { %1736 = vst.msk [vmem:[#allocation2 + $0xb0] sm:$0xff] %vm439_vm0, %v1704_v24  ;;  %v1707_v58 = vadd.f32 %v2598_v32, %v1353_v10 }
 0x229   : > { %v1643_v14 = vpop.f32.mrf.mxu0 }
 0x22a   : > { %1739 = vst.msk [vmem:[#allocation2 + $0xc8] sm:$0xff] %vm439_vm0, %v1707_v58  ;;  %v1706_v41 = vadd.f32 %v1643_v14, %v1352_v23 }
 0x22b   : > { %v2601_v61 = vpop.f32.mrf.mxu0 }
 0x22c   : > { %1738 = vst.msk [vmem:[#allocation2 + $0xc0] sm:$0xff] %vm439_vm0, %v1706_v41  ;;  %v1709_v59 = vadd.f32 %v2601_v61, %v1355_v27 }
 0x22d   : > { %v1653_v31 = vpop.f32.mrf.mxu0 }
 0x22e   : > { %1741 = vst.msk [vmem:[#allocation2 + $0xd8] sm:$0xff] %vm439_vm0, %v1709_v59  ;;  %v1708_v34 = vadd.f32 %v1653_v31, %v1354_v2 }
 0x22f   : > { %v2604_v60 = vpop.f32.mrf.mxu0 }
 0x230   : > { %1740 = vst.msk [vmem:[#allocation2 + $0xd0] sm:$0xff] %vm439_vm0, %v1708_v34  ;;  %v1711_v55 = vadd.f32 %v2604_v60, %v1357_v33 }
 0x231   : > { %v1663_v21 = vpop.f32.mrf.mxu0 }
 0x232   : > { %1743 = vst.msk [vmem:[#allocation2 + $0xe8] sm:$0xff] %vm439_vm0, %v1711_v55  ;;  %v1710_v26 = vadd.f32 %v1663_v21, %v1356_v50 }
 0x233   : > { %v2607_v51 = vpop.f32.mrf.mxu0 }
 0x234   : > { %1742 = vst.msk [vmem:[#allocation2 + $0xe0] sm:$0xff] %vm439_vm0, %v1710_v26  ;;  %v1713_v1 = vadd.f32 %v2607_v51, %v1359_v47 }
 0x235   : > { %v1673_v39 = vpop.f32.mrf.mxu0 }
 0x236   : > { %1745 = vst.msk [vmem:[#allocation2 + $0xf8] sm:$0xff] %vm439_vm0, %v1713_v1  ;;  %v1712_v28 = vadd.f32 %v1673_v39, %v1358_v38 }
 0x238   : > { %1744 = vst.msk [vmem:[#allocation2 + $0xf0] sm:$0xff] %vm439_vm0, %v1712_v28 }
 0x239 PF: > { %v1783_v56 = vld [vmem:[%s2953_s25 + $0x10] sm:$0xff]  ;;  %v1781_v40 = vld [vmem:[%s2953_s25] sm:$0xff]  ;;  %v2827_v42 = vmov 0   ;;  %v1784_v0 = vld [vmem:[%s2953_s25 + $0x18] sm:$0xff] }
 0x23a   : > { %2773 = vset.pattern.permute.xlu1 %v2827_v42  ;;  %2772 = vset.pattern.permute.xlu0 %v2827_v42  ;;  %v1782_v17 = vld [vmem:[%s2953_s25 + $0x8] sm:$0xff]  ;;  %v1785_v7 = vld [vmem:[%s2953_s25 + $0x20] sm:$0xff]  ;;  %v1788_v62 = vld [vmem:[%s2953_s25 + $0x38] sm:$0xff] }
 0x23b   : > { %1825 = vperm.xlu1 %2773, %v1783_v56   ;;  %1815 = vperm.xlu0 %2772, %v1781_v40   ;;  %v1786_v43 = vld [vmem:[%s2953_s25 + $0x28] sm:$0xff]  ;;  %v1787_v44 = vld [vmem:[%s2953_s25 + $0x30] sm:$0xff]  ;;  %v1789_v48 = vld [vmem:[%s2953_s25 + $0x40] sm:$0xff] }
 0x23c   : > { %v1790_v46 = vld [vmem:[%s2953_s25 + $0x48] sm:$0xff]  ;;  %v1792_v35 = vld [vmem:[%s2953_s25 + $0x58] sm:$0xff]  ;;  %v1791_v3 = vld [vmem:[%s2953_s25 + $0x50] sm:$0xff] }
 0x23d   : > { %v1794_v37 = vld [vmem:[%s2953_s25 + $0x68] sm:$0xff]  ;;  %v1793_v15 = vld [vmem:[%s2953_s25 + $0x60] sm:$0xff]  ;;  %v1796_v4 = vld [vmem:[%s2953_s25 + $0x78] sm:$0xff] }
 0x23e   : > { %v1795_v8 = vld [vmem:[%s2953_s25 + $0x70] sm:$0xff]  ;;  %v1798_v57 = vld [vmem:[%s2953_s25 + $0x88] sm:$0xff]  ;;  %v1797_v6 = vld [vmem:[%s2953_s25 + $0x80] sm:$0xff] }
 0x23f   : > { %1830 = vperm.xlu1 %2773, %v1784_v0   ;;  %1820 = vperm.xlu0 %2772, %v1782_v17   ;;  %v1800_v63 = vld [vmem:[%s2953_s25 + $0x98] sm:$0xff]  ;;  %v1799_v16 = vld [vmem:[%s2953_s25 + $0x90] sm:$0xff]  ;;  %v1802_v22 = vld [vmem:[%s2953_s25 + $0xa8] sm:$0xff] }
 0x240   : > { %v1801_v11 = vld [vmem:[%s2953_s25 + $0xa0] sm:$0xff]  ;;  %v1804_v45 = vld [vmem:[%s2953_s25 + $0xb8] sm:$0xff]  ;;  %v1803_v49 = vld [vmem:[%s2953_s25 + $0xb0] sm:$0xff] }
 0x241   : > { %v1806_v54 = vld [vmem:[%s2953_s25 + $0xc8] sm:$0xff]  ;;  %v1805_v52 = vld [vmem:[%s2953_s25 + $0xc0] sm:$0xff]  ;;  %v1808_v9 = vld [vmem:[%s2953_s25 + $0xd8] sm:$0xff] }
 0x242   : > { %v1807_v29 = vld [vmem:[%s2953_s25 + $0xd0] sm:$0xff]  ;;  %v1810_v30 = vld [vmem:[%s2953_s25 + $0xe8] sm:$0xff]  ;;  %v1809_v18 = vld [vmem:[%s2953_s25 + $0xe0] sm:$0xff] }
 0x243   : > { %1840 = vperm.xlu1 %2773, %v1786_v43   ;;  %1835 = vperm.xlu0 %2772, %v1785_v7   ;;  %v1812_v5 = vld [vmem:[%s2953_s25 + $0xf8] sm:$0xff]  ;;  %v1811_v20 = vld [vmem:[%s2953_s25 + $0xf0] sm:$0xff]  ;;  %v1749_v12 = vld [vmem:[#allocation2] sm:$0xff] }
 0x244   : > { %v1751_v36 = vld [vmem:[#allocation2 + $0x10] sm:$0xff]  ;;  %v1752_v10 = vld [vmem:[#allocation2 + $0x18] sm:$0xff]  ;;  %v1750_v24 = vld [vmem:[#allocation2 + $0x8] sm:$0xff] }
 0x245   : > { %v1754_v27 = vld [vmem:[#allocation2 + $0x28] sm:$0xff]  ;;  %v1753_v41 = vld [vmem:[#allocation2 + $0x20] sm:$0xff]  ;;  %v1756_v33 = vld [vmem:[#allocation2 + $0x38] sm:$0xff] }
 0x246   : > { %v1755_v34 = vld [vmem:[#allocation2 + $0x30] sm:$0xff]  ;;  %v1758_v47 = vld [vmem:[#allocation2 + $0x48] sm:$0xff]  ;;  %v1757_v26 = vld [vmem:[#allocation2 + $0x40] sm:$0xff] }
 0x247   : > { %1850 = vperm.xlu1 %2773, %v1788_v62   ;;  %1845 = vperm.xlu0 %2772, %v1787_v44   ;;  %v1760_v28 = vld [vmem:[#allocation2 + $0x58] sm:$0xff]  ;;  %v1759_v56 = vld [vmem:[#allocation2 + $0x50] sm:$0xff]  ;;  %v1762_v43 = vld [vmem:[#allocation2 + $0x68] sm:$0xff] }
 0x248   : > { %v1761_v7 = vld [vmem:[#allocation2 + $0x60] sm:$0xff] }
 0x24b   : > { %1860 = vperm.xlu1 %2773, %v1790_v46   ;;  %1855 = vperm.xlu0 %2772, %v1789_v48  }
 0x24f   : > { %1870 = vperm.xlu1 %2773, %v1792_v35   ;;  %1865 = vperm.xlu0 %2772, %v1791_v3   ;;  %v1764_v35 = vld [vmem:[#allocation2 + $0x78] sm:$0xff]  ;;  %v1763_v3 = vld [vmem:[#allocation2 + $0x70] sm:$0xff] }
 0x253   : > { %1880 = vperm.xlu1 %2773, %v1794_v37   ;;  %1875 = vperm.xlu0 %2772, %v1793_v15  }
 0x257   : > { %1890 = vperm.xlu1 %2773, %v1796_v4   ;;  %1885 = vperm.xlu0 %2772, %v1795_v8  }
 0x25b   : > { %1900 = vperm.xlu1 %2773, %v1798_v57   ;;  %1895 = vperm.xlu0 %2772, %v1797_v6   ;;  %v1766_v57 = vld [vmem:[#allocation2 + $0x88] sm:$0xff]  ;;  %v1765_v6 = vld [vmem:[#allocation2 + $0x80] sm:$0xff] }
 0x25f   : > { %1910 = vperm.xlu1 %2773, %v1800_v63   ;;  %1905 = vperm.xlu0 %2772, %v1799_v16  }
 0x263   : > { %1920 = vperm.xlu1 %2773, %v1802_v22   ;;  %1915 = vperm.xlu0 %2772, %v1801_v11  }
 0x267   : > { %1930 = vperm.xlu1 %2773, %v1804_v45   ;;  %1925 = vperm.xlu0 %2772, %v1803_v49   ;;  %v1768_v45 = vld [vmem:[#allocation2 + $0x98] sm:$0xff]  ;;  %v1767_v49 = vld [vmem:[#allocation2 + $0x90] sm:$0xff] }
 0x26b   : > { %1940 = vperm.xlu1 %2773, %v1806_v54   ;;  %1935 = vperm.xlu0 %2772, %v1805_v52  }
 0x26f   : > { %1950 = vperm.xlu1 %2773, %v1808_v9   ;;  %1945 = vperm.xlu0 %2772, %v1807_v29  }
 0x273   : > { %1960 = vperm.xlu1 %2773, %v1810_v30   ;;  %1955 = vperm.xlu0 %2772, %v1809_v18   ;;  %v1770_v30 = vld [vmem:[#allocation2 + $0xa8] sm:$0xff]  ;;  %v1769_v18 = vld [vmem:[#allocation2 + $0xa0] sm:$0xff] }
 0x277   : > { %1970 = vperm.xlu1 %2773, %v1812_v5   ;;  %1965 = vperm.xlu0 %2772, %v1811_v20  }
 0x2b6   : > { %v1826_v25 = vpop.permute.xlu1 %1825  ;;  %v1816_v13 = vpop.permute.xlu0 %1815 }
 0x2b7   : > { %v1975_v53 = vmul.f32 %v1826_v25, %v1751_v36  ;;  %v1973_v19 = vmul.f32 %v1816_v13, %v1749_v12  ;;  %v1772_v25 = vld [vmem:[#allocation2 + $0xb8] sm:$0xff]  ;;  %v1771_v13 = vld [vmem:[#allocation2 + $0xb0] sm:$0xff] }
 0x2b9   : > { %2008 = vst.msk [vmem:[%s2960_s28 + $0x10] sm:$0xff] %vm439_vm0, %v1975_v53  ;;  %2006 = vst.msk [vmem:[%s2960_s28] sm:$0xff] %vm439_vm0, %v1973_v19 }
 0x2ba   : > { %v1831_v32 = vpop.permute.xlu1 %1830  ;;  %v1821_v23 = vpop.permute.xlu0 %1820 }
 0x2bb   : > { %v1976_v58 = vmul.f32 %v1831_v32, %v1752_v10  ;;  %v1974_v14 = vmul.f32 %v1821_v23, %v1750_v24  ;;  %v1774_v32 = vld [vmem:[#allocation2 + $0xc8] sm:$0xff]  ;;  %v1773_v23 = vld [vmem:[#allocation2 + $0xc0] sm:$0xff] }
 0x2bd   : > { %2009 = vst.msk [vmem:[%s2960_s28 + $0x18] sm:$0xff] %vm439_vm0, %v1976_v58  ;;  %2007 = vst.msk [vmem:[%s2960_s28 + $0x8] sm:$0xff] %vm439_vm0, %v1974_v14 }
 0x2be   : > { %v1841_v61 = vpop.permute.xlu1 %1840  ;;  %v1836_v2 = vpop.permute.xlu0 %1835 }
 0x2bf   : > { %v1978_v59 = vmul.f32 %v1841_v61, %v1754_v27  ;;  %v1977_v31 = vmul.f32 %v1836_v2, %v1753_v41  ;;  %v1776_v61 = vld [vmem:[#allocation2 + $0xd8] sm:$0xff]  ;;  %v1775_v2 = vld [vmem:[#allocation2 + $0xd0] sm:$0xff] }
 0x2c1   : > { %2011 = vst.msk [vmem:[%s2960_s28 + $0x28] sm:$0xff] %vm439_vm0, %v1978_v59  ;;  %2010 = vst.msk [vmem:[%s2960_s28 + $0x20] sm:$0xff] %vm439_vm0, %v1977_v31 }
 0x2c2   : > { %v1851_v60 = vpop.permute.xlu1 %1850  ;;  %v1846_v50 = vpop.permute.xlu0 %1845 }
 0x2c3   : > { %v1980_v55 = vmul.f32 %v1851_v60, %v1756_v33  ;;  %v1979_v21 = vmul.f32 %v1846_v50, %v1755_v34  ;;  %v1778_v60 = vld [vmem:[#allocation2 + $0xe8] sm:$0xff]  ;;  %v1777_v50 = vld [vmem:[#allocation2 + $0xe0] sm:$0xff] }
 0x2c5   : > { %2013 = vst.msk [vmem:[%s2960_s28 + $0x38] sm:$0xff] %vm439_vm0, %v1980_v55  ;;  %2012 = vst.msk [vmem:[%s2960_s28 + $0x30] sm:$0xff] %vm439_vm0, %v1979_v21 }
 0x2c6   : > { %v1861_v51 = vpop.permute.xlu1 %1860  ;;  %v1856_v38 = vpop.permute.xlu0 %1855 }
 0x2c7   : > { %v1982_v1 = vmul.f32 %v1861_v51, %v1758_v47  ;;  %v1981_v39 = vmul.f32 %v1856_v38, %v1757_v26  ;;  %v1780_v51 = vld [vmem:[#allocation2 + $0xf8] sm:$0xff]  ;;  %v1779_v38 = vld [vmem:[#allocation2 + $0xf0] sm:$0xff] }
 0x2c9   : > { %2015 = vst.msk [vmem:[%s2960_s28 + $0x48] sm:$0xff] %vm439_vm0, %v1982_v1  ;;  %2014 = vst.msk [vmem:[%s2960_s28 + $0x40] sm:$0xff] %vm439_vm0, %v1981_v39 }
 0x2ca   : > { %v1871_v40 = vpop.permute.xlu1 %1870  ;;  %v1866_v42 = vpop.permute.xlu0 %1865 }
 0x2cb   : > { %v1984_v0 = vmul.f32 %v1871_v40, %v1760_v28  ;;  %v1983_v17 = vmul.f32 %v1866_v42, %v1759_v56 }
 0x2cd   : > { %2017 = vst.msk [vmem:[%s2960_s28 + $0x58] sm:$0xff] %vm439_vm0, %v1984_v0  ;;  %2016 = vst.msk [vmem:[%s2960_s28 + $0x50] sm:$0xff] %vm439_vm0, %v1983_v17 }
 0x2ce   : > { %v1881_v62 = vpop.permute.xlu1 %1880  ;;  %v1876_v44 = vpop.permute.xlu0 %1875 }
 0x2cf   : > { %v1986_v46 = vmul.f32 %v1881_v62, %v1762_v43  ;;  %v1985_v48 = vmul.f32 %v1876_v44, %v1761_v7 }
 0x2d1   : > { %2019 = vst.msk [vmem:[%s2960_s28 + $0x68] sm:$0xff] %vm439_vm0, %v1986_v46  ;;  %2018 = vst.msk [vmem:[%s2960_s28 + $0x60] sm:$0xff] %vm439_vm0, %v1985_v48 }
 0x2d2   : > { %v1891_v37 = vpop.permute.xlu1 %1890  ;;  %v1886_v15 = vpop.permute.xlu0 %1885 }
 0x2d3   : > { %v1988_v4 = vmul.f32 %v1891_v37, %v1764_v35  ;;  %v1987_v8 = vmul.f32 %v1886_v15, %v1763_v3 }
 0x2d5   : > { %2021 = vst.msk [vmem:[%s2960_s28 + $0x78] sm:$0xff] %vm439_vm0, %v1988_v4  ;;  %2020 = vst.msk [vmem:[%s2960_s28 + $0x70] sm:$0xff] %vm439_vm0, %v1987_v8 }
 0x2d6   : > { %v1901_v63 = vpop.permute.xlu1 %1900  ;;  %v1896_v16 = vpop.permute.xlu0 %1895 }
 0x2d7   : > { %v1990_v22 = vmul.f32 %v1901_v63, %v1766_v57  ;;  %v1989_v11 = vmul.f32 %v1896_v16, %v1765_v6 }
 0x2d9   : > { %2023 = vst.msk [vmem:[%s2960_s28 + $0x88] sm:$0xff] %vm439_vm0, %v1990_v22  ;;  %2022 = vst.msk [vmem:[%s2960_s28 + $0x80] sm:$0xff] %vm439_vm0, %v1989_v11 }
 0x2da   : > { %v1911_v54 = vpop.permute.xlu1 %1910  ;;  %v1906_v52 = vpop.permute.xlu0 %1905 }
 0x2db   : > { %v1992_v9 = vmul.f32 %v1911_v54, %v1768_v45  ;;  %v1991_v29 = vmul.f32 %v1906_v52, %v1767_v49 }
 0x2dd   : > { %2025 = vst.msk [vmem:[%s2960_s28 + $0x98] sm:$0xff] %vm439_vm0, %v1992_v9  ;;  %2024 = vst.msk [vmem:[%s2960_s28 + $0x90] sm:$0xff] %vm439_vm0, %v1991_v29 }
 0x2de   : > { %v1921_v5 = vpop.permute.xlu1 %1920  ;;  %v1916_v20 = vpop.permute.xlu0 %1915 }
 0x2df   : > { %v1994_v36 = vmul.f32 %v1921_v5, %v1770_v30  ;;  %v1993_v12 = vmul.f32 %v1916_v20, %v1769_v18 }
 0x2e1   : > { %2027 = vst.msk [vmem:[%s2960_s28 + $0xa8] sm:$0xff] %vm439_vm0, %v1994_v36  ;;  %2026 = vst.msk [vmem:[%s2960_s28 + $0xa0] sm:$0xff] %vm439_vm0, %v1993_v12 }
 0x2e2   : > { %v1931_v53 = vpop.permute.xlu1 %1930  ;;  %v1926_v19 = vpop.permute.xlu0 %1925 }
 0x2e3   : > { %v1996_v10 = vmul.f32 %v1931_v53, %v1772_v25  ;;  %v1995_v24 = vmul.f32 %v1926_v19, %v1771_v13 }
 0x2e5   : > { %2029 = vst.msk [vmem:[%s2960_s28 + $0xb8] sm:$0xff] %vm439_vm0, %v1996_v10  ;;  %2028 = vst.msk [vmem:[%s2960_s28 + $0xb0] sm:$0xff] %vm439_vm0, %v1995_v24 }
 0x2e6   : > { %v1941_v58 = vpop.permute.xlu1 %1940  ;;  %v1936_v14 = vpop.permute.xlu0 %1935 }
 0x2e7   : > { %v1998_v27 = vmul.f32 %v1941_v58, %v1774_v32  ;;  %v1997_v41 = vmul.f32 %v1936_v14, %v1773_v23 }
 0x2e9   : > { %2031 = vst.msk [vmem:[%s2960_s28 + $0xc8] sm:$0xff] %vm439_vm0, %v1998_v27  ;;  %2030 = vst.msk [vmem:[%s2960_s28 + $0xc0] sm:$0xff] %vm439_vm0, %v1997_v41 }
 0x2ea   : > { %v1951_v59 = vpop.permute.xlu1 %1950  ;;  %v1946_v31 = vpop.permute.xlu0 %1945 }
 0x2eb   : > { %v2000_v33 = vmul.f32 %v1951_v59, %v1776_v61  ;;  %v1999_v34 = vmul.f32 %v1946_v31, %v1775_v2 }
 0x2ed   : > { %2033 = vst.msk [vmem:[%s2960_s28 + $0xd8] sm:$0xff] %vm439_vm0, %v2000_v33  ;;  %2032 = vst.msk [vmem:[%s2960_s28 + $0xd0] sm:$0xff] %vm439_vm0, %v1999_v34 }
 0x2ee   : > { %v1961_v55 = vpop.permute.xlu1 %1960  ;;  %v1956_v21 = vpop.permute.xlu0 %1955 }
 0x2ef   : > { %v2002_v47 = vmul.f32 %v1961_v55, %v1778_v60  ;;  %v2001_v26 = vmul.f32 %v1956_v21, %v1777_v50 }
 0x2f1   : > { %2035 = vst.msk [vmem:[%s2960_s28 + $0xe8] sm:$0xff] %vm439_vm0, %v2002_v47  ;;  %2034 = vst.msk [vmem:[%s2960_s28 + $0xe0] sm:$0xff] %vm439_vm0, %v2001_v26 }
 0x2f2   : > { %v1971_v1 = vpop.permute.xlu1 %1970  ;;  %v1966_v39 = vpop.permute.xlu0 %1965 }
 0x2f3   : > { %v2004_v28 = vmul.f32 %v1971_v1, %v1780_v51  ;;  %v2003_v56 = vmul.f32 %v1966_v39, %v1779_v38 }
 0x2f5   : > { %2037 = vst.msk [vmem:[%s2960_s28 + $0xf8] sm:$0xff] %vm439_vm0, %v2004_v28  ;;  %2036 = vst.msk [vmem:[%s2960_s28 + $0xf0] sm:$0xff] %vm439_vm0, %v2003_v56 }
 0x2f6 PF: > { %s27_s11 = sadd.s32 1, %s2822_s11   ;;  %s3483_s1 = smov %s2818_s10 }
 0x2f7   : > { %p24_p5 = scmp.ge.s32.totalorder %s27_s11, 7   ;;  %s3484_s10 = smov %s3486_s12 }
 0x2f9   :  { %26 = sbr.rel (!%p24_p5) target bundleno = 27 (0x1b), region = 94 }

</bundles_post_ra>
